<compile_context>
chip_gen: v6e
topology: v6e:2x2x1
jax: 0.10.0
libtpu: 0.0.40
codegen_flags: <defaults>
</compile_context>

<pallas_src>
import jax
import jax.numpy as jnp
from jax.experimental import pallas as pl
from jax.experimental.pallas import tpu as pltpu

LEAKY_SLOPE = 0.01           # F.leaky_relu default negative_slope
FEAT_OUT = 512               # implied feature-extractor output width
EMB = 256                    # lin1 / lin2 / fc_action1 width
SA_DIM = FEAT_OUT + 3 * EMB  # 1280
VMEM_LIMIT_BYTES = 48 << 20  # explicit scoped-VMEM cap (v5e default is 16 MiB;
                             # stays under v7x's 64 MiB physical VMEM)


def _leaky_relu(x):
    return jnp.where(x > 0, x, LEAKY_SLOPE * x)


def _round_up(n, m):
    return ((n + m - 1) // m) * m


def _choose_block_b(B):
    """Batch-tile heuristic (all generations):
       * multiple of 16 (bf16 native (16,128) tile),
       * minimal padding,
       * >=2 grid steps when it costs no extra padding (v7x megacore + DMA
         double-buffering),
       * large tiles (<=512 rows) for big batches to amortize per-step overhead.
    """
    b16 = _round_up(max(B, 1), 16)
    if b16 <= 512:
        # Split into two grid steps when that keeps 16-row alignment for free.
        return b16 // 2 if b16 % 32 == 0 else b16
    # Large batch: pick the tile in {512, 256, 128} that minimizes padding
    # (ties -> larger tile for fewer grid steps).
    best_bb, best_pad = 512, _round_up(B, 512) - B
    for bb in (256, 128):
        pad = _round_up(B, bb) - B
        if pad < best_pad:
            best_bb, best_pad = bb, pad
    return best_bb


def critic_kernel(depth_ref, scal_ref, wfe_ref, wl1_ref, wl2_ref,
                  emb_ref, head_ref, q_ref):
    f32 = jnp.float32
    bf16 = jnp.bfloat16

    # ---- feature extractor (stand-in): obv = depth_flat @ Wfe + bfe   (bb, 512)
    # depth arrives f32 from HBM; pack to bf16 here (hidden under the MXU pass).
    bfe = head_ref[0:1, :]                                   # (1, 512)
    obv = jnp.dot(depth_ref[...].astype(bf16), wfe_ref[...],
                  preferred_element_type=f32) + bfe

    # ---- tiny scalar / action embeddings: K=1 / K=2 "matmuls" expressed as
    # broadcast outer products on the VPU (f32).
    scal = scal_ref[...]                                     # (bb, 4)
    lg, ang = scal[:, 0:1], scal[:, 1:2]
    a0, a1 = scal[:, 2:3], scal[:, 3:4]
    lg_emb = _leaky_relu(lg * emb_ref[0:1, :] + emb_ref[1:2, :])       # (bb, 256)
    ang_emb = _leaky_relu(ang * emb_ref[2:3, :] + emb_ref[3:4, :])     # (bb, 256)
    act_emb = _leaky_relu(a0 * emb_ref[4:5, :] + a1 * emb_ref[5:6, :]
                          + emb_ref[6:7, :])                           # (bb, 256)

    # ---- l1: relu([obv | lg | ang | act] @ Wl1 + bl1) as 4 partial dots on
    # row-slices of Wl1 (the 1280-wide concat never materializes).
    bl1 = head_ref[1:2, 0:128]
    h1 = jnp.dot(obv.astype(bf16), wl1_ref[0:FEAT_OUT, :],
                 preferred_element_type=f32)
    h1 = h1 + jnp.dot(lg_emb.astype(bf16),
                      wl1_ref[FEAT_OUT:FEAT_OUT + EMB, :],
                      preferred_element_type=f32)
    h1 = h1 + jnp.dot(ang_emb.astype(bf16),
                      wl1_ref[FEAT_OUT + EMB:FEAT_OUT + 2 * EMB, :],
                      preferred_element_type=f32)
    h1 = h1 + jnp.dot(act_emb.astype(bf16),
                      wl1_ref[FEAT_OUT + 2 * EMB:SA_DIM, :],
                      preferred_element_type=f32)
    h1 = jnp.maximum(h1 + bl1, 0.0)                                    # (bb, 128)

    # ---- l2
    bl2 = head_ref[2:3, 0:64]
    h2 = jnp.maximum(jnp.dot(h1.astype(bf16), wl2_ref[...],
                             preferred_element_type=f32) + bl2, 0.0)   # (bb, 64)

    # ---- l3: Linear(64 -> 1) as a lane reduction (free XLU slot, not an MXU pass).
    # (B,1) output is fine at these batch sizes; switch to a lane-dense slab
    # only if B grows to >=1-2K.
    wl3t = head_ref[3:4, 0:64]
    bl3 = head_ref[4:5, 0:1]
    q_ref[...] = jnp.sum(h2 * wl3t, axis=1, keepdims=True) + bl3       # (bb, 1)


def prepare_params(params):
    """One-time (init-time) weight prep.

    bf16 casts of the matmul weights and packing of the tiny per-feature params
    happen HERE, not in the per-call forward, so the kernel's own weight DMA
    (~1.4 MiB at in_feat=1024) is the only per-forward weight traffic.
    """
    prep = {
        "wfe": params["wfe"].astype(jnp.bfloat16),            # (in_feat, 512)
        "wl1": params["wl1"].astype(jnp.bfloat16),            # (1280, 128)
        "wl2": params["wl2"].astype(jnp.bfloat16),            # (128, 64)
    }

    prep["emb_pack"] = jnp.concatenate([
        params["w1"], params["b1"],          # lin1
        params["w2"], params["b2"],          # lin2
        params["wa"], params["ba"],          # fc_action1 (wa is (2,256))
        jnp.zeros((1, EMB), jnp.float32),
    ], axis=0)                                                 # (8, 256)

    def _row(x, width=FEAT_OUT):
        x = x.reshape(1, -1).astype(jnp.float32)
        return jnp.pad(x, ((0, 0), (0, width - x.shape[1])))

    prep["head_pack"] = jnp.concatenate([
        _row(params["bfe"]),    # row 0: feature-extractor bias (512)
        _row(params["bl1"]),    # row 1: l1 bias (128)
        _row(params["bl2"]),    # row 2: l2 bias (64)
        _row(params["wl3t"]),   # row 3: l3 weight, transposed (64)
        _row(params["bl3"]),    # row 4: l3 bias (1)
        jnp.zeros((3, FEAT_OUT), jnp.float32),
    ], axis=0)                                                 # (8, 512)
    return prep


def critic_forward(depth, local_goal_point, angle, a, prep):
    B = depth.shape[0]

    # --- activations: depth NCHW -> (B, C*H*W); kept f32 (bf16 pack happens
    # in-kernel).  Tiny scalar inputs packed into one (B, 4) tile.
    depth_flat = depth.reshape(B, -1)
    in_feat = depth_flat.shape[1]
    scal = jnp.concatenate([
        local_goal_point.astype(jnp.float32).reshape(-1, 1),   # .float().view(-1,1)
        angle.astype(jnp.float32).reshape(-1, 1),               # .view(-1,1)
        a.astype(jnp.float32).reshape(B, 2),
    ], axis=1)                                                   # (B, 4)

    # --- batch grid axis ("parallel" -> megacore sharding, double-buffered
    # activation DMA); weights use constant index maps so they stay resident.
    block_b = _choose_block_b(B)
    padded_B = _round_up(B, block_b)
    if padded_B != B:
        pad = padded_B - B
        depth_flat = jnp.pad(depth_flat, ((0, pad), (0, 0)))
        scal = jnp.pad(scal, ((0, pad), (0, 0)))
    grid = (padded_B // block_b,)

    q = pl.pallas_call(
        critic_kernel,
        out_shape=jax.ShapeDtypeStruct((padded_B, 1), jnp.float32),
        grid_spec=pltpu.PrefetchScalarGridSpec(
            num_scalar_prefetch=0,
            grid=grid,
            in_specs=[
                pl.BlockSpec((block_b, in_feat), lambda i: (i, 0)),   # depth tile (f32)
                pl.BlockSpec((block_b, 4), lambda i: (i, 0)),         # packed scalars
                pl.BlockSpec((in_feat, FEAT_OUT), lambda i: (0, 0)),  # wfe (bf16)
                pl.BlockSpec((SA_DIM, 128), lambda i: (0, 0)),        # wl1 (bf16)
                pl.BlockSpec((128, 64), lambda i: (0, 0)),            # wl2 (bf16)
                pl.BlockSpec((8, EMB), lambda i: (0, 0)),             # emb pack
                pl.BlockSpec((8, FEAT_OUT), lambda i: (0, 0)),        # head pack
            ],
            out_specs=pl.BlockSpec((block_b, 1), lambda i: (i, 0)),
        ),
        compiler_params=pltpu.CompilerParams(
            dimension_semantics=("parallel",),
            vmem_limit_bytes=VMEM_LIMIT_BYTES),
    )(depth_flat, scal, prep["wfe"], prep["wl1"], prep["wl2"],
      prep["emb_pack"], prep["head_pack"])

    return q[:B]


def init_params(key, in_feat):
    """Deterministic synthetic init mirroring nn.Linear's U(-1/sqrt(in), 1/sqrt(in)).

    Weights are stored TRANSPOSED vs. PyTorch, i.e. (in, out), so y = x @ W + b.
    """
    def linear(k, fan_in, fan_out):
        k1, k2 = jax.random.split(k)
        bound = 1.0 / float(fan_in) ** 0.5
        w = jax.random.uniform(k1, (fan_in, fan_out), jnp.float32, -bound, bound)
        b = jax.random.uniform(k2, (1, fan_out), jnp.float32, -bound, bound)
        return w, b

    keys = jax.random.split(key, 7)
    p = {}
    p["wfe"], p["bfe"] = linear(keys[0], in_feat, FEAT_OUT)   # stand-in feature extractor
    p["w1"], p["b1"] = linear(keys[1], 1, EMB)                # lin1
    p["w2"], p["b2"] = linear(keys[2], 1, EMB)                # lin2
    p["wa"], p["ba"] = linear(keys[3], 2, EMB)                # fc_action1
    p["wl1"], p["bl1"] = linear(keys[4], SA_DIM, 128)         # l1
    p["wl2"], p["bl2"] = linear(keys[5], 128, 64)             # l2
    wl3, bl3 = linear(keys[6], 64, 1)                         # l3
    p["wl3t"] = wl3.T                                         # (1, 64) for lane reduce
    p["bl3"] = bl3                                            # (1, 1)
    return p


def critic_reference(depth, local_goal_point, angle, a, params):
    """Pure-JAX reference mirroring the kernel's bf16-weight numerics."""
    f32, bf16 = jnp.float32, jnp.bfloat16
    B = depth.shape[0]
    x = depth.reshape(B, -1).astype(bf16)
    obv = jnp.dot(x, params["wfe"].astype(bf16),
                  preferred_element_type=f32) + params["bfe"]

    lrelu = lambda t: jnp.where(t > 0, t, LEAKY_SLOPE * t)
    lgc = local_goal_point.astype(f32).reshape(-1, 1)
    angc = angle.astype(f32).reshape(-1, 1)
    af = a.astype(f32)
    lg = lrelu(lgc * params["w1"] + params["b1"])
    an = lrelu(angc * params["w2"] + params["b2"])
    ac = lrelu(af[:, 0:1] * params["wa"][0:1, :]
               + af[:, 1:2] * params["wa"][1:2, :] + params["ba"])

    wl1 = params["wl1"].astype(bf16)
    h1 = (jnp.dot(obv.astype(bf16), wl1[0:FEAT_OUT], preferred_element_type=f32)
          + jnp.dot(lg.astype(bf16), wl1[FEAT_OUT:FEAT_OUT + EMB],
                    preferred_element_type=f32)
          + jnp.dot(an.astype(bf16), wl1[FEAT_OUT + EMB:FEAT_OUT + 2 * EMB],
                    preferred_element_type=f32)
          + jnp.dot(ac.astype(bf16), wl1[FEAT_OUT + 2 * EMB:SA_DIM],
                    preferred_element_type=f32)
          + params["bl1"])
    h1 = jax.nn.relu(h1)
    h2 = jax.nn.relu(jnp.dot(h1.astype(bf16), params["wl2"].astype(bf16),
                             preferred_element_type=f32) + params["bl2"])
    return jnp.sum(h2 * params["wl3t"], axis=1, keepdims=True) + params["bl3"]


if __name__ == "__main__":
    key = jax.random.PRNGKey(0)
    kd, kl, ka, kact, kp = jax.random.split(key, 5)

    B, C, H, W = 32, 1, 32, 32
    depth = jax.random.normal(kd, (B, C, H, W), jnp.float32)          # NCHW depth image
    local_goal_point = jax.random.normal(kl, (B,), jnp.float32)
    angle = jax.random.normal(ka, (B,), jnp.float32)
    a = jax.random.normal(kact, (B, 2), jnp.float32)                  # 2-D continuous action

    params = init_params(kp, C * H * W)
    prep = jax.block_until_ready(prepare_params(params))              # one-time weight prep

    fwd = jax.jit(critic_forward)
    q1 = jax.block_until_ready(fwd(depth, local_goal_point, angle, a, prep))

    q1_ref = critic_reference(depth, local_goal_point, angle, a, params)
    assert q1.shape == (B, 1)
    assert jnp.allclose(q1, q1_ref, atol=1e-3, rtol=1e-3), "mismatch vs JAX reference"

    print("KERNEL_OK")
</pallas_src>

<mosaic_0001>
module attributes {stable_mosaic.version = 11 : i64} {
  func.func @critic_kernel(%arg0: i32, %arg1: memref<16x1024xf32, #tpu.memory_space<vmem>>, %arg2: memref<16x4xf32, #tpu.memory_space<vmem>>, %arg3: memref<1024x512xbf16, #tpu.memory_space<vmem>>, %arg4: memref<1280x128xbf16, #tpu.memory_space<vmem>>, %arg5: memref<128x64xbf16, #tpu.memory_space<vmem>>, %arg6: memref<8x256xf32, #tpu.memory_space<vmem>>, %arg7: memref<8x512xf32, #tpu.memory_space<vmem>>, %arg8: memref<16x1xf32, #tpu.memory_space<vmem>>) attributes {dimension_semantics = [#tpu.dimension_semantics<parallel>], iteration_bounds = array<i64: 2>, scalar_prefetch = 0 : i64, scratch_operands = 0 : i64, tpu.core_type = #tpu.core_type<tc>, window_params = [{transform_indices = @transform_0, window_bounds = array<i64: 16, 1024>}, {transform_indices = @transform_1, window_bounds = array<i64: 16, 4>}, {pipeline_mode = #tpu.pipeline_mode<synchronous>, transform_indices = @transform_2, window_bounds = array<i64: 1024, 512>}, {pipeline_mode = #tpu.pipeline_mode<synchronous>, transform_indices = @transform_3, window_bounds = array<i64: 1280, 128>}, {pipeline_mode = #tpu.pipeline_mode<synchronous>, transform_indices = @transform_4, window_bounds = array<i64: 128, 64>}, {pipeline_mode = #tpu.pipeline_mode<synchronous>, transform_indices = @transform_5, window_bounds = array<i64: 8, 256>}, {pipeline_mode = #tpu.pipeline_mode<synchronous>, transform_indices = @transform_6, window_bounds = array<i64: 8, 512>}, {transform_indices = @transform_7, window_bounds = array<i64: 16, 1>}]} {
    %c0 = arith.constant 0 : index
    %c0_0 = arith.constant 0 : index
    %0 = vector.load %arg7[%c0, %c0_0] : memref<8x512xf32, #tpu.memory_space<vmem>>, vector<1x512xf32>
    %c0_1 = arith.constant 0 : index
    %c0_2 = arith.constant 0 : index
    %1 = vector.load %arg1[%c0_1, %c0_2] : memref<16x1024xf32, #tpu.memory_space<vmem>>, vector<16x1024xf32>
    %2 = arith.truncf %1 : vector<16x1024xf32> to vector<16x1024xbf16>
    %c0_3 = arith.constant 0 : index
    %c0_4 = arith.constant 0 : index
    %3 = vector.load %arg3[%c0_3, %c0_4] : memref<1024x512xbf16, #tpu.memory_space<vmem>>, vector<1024x512xbf16>
    %cst = arith.constant dense<0.000000e+00> : vector<16x512xf32>
    %4 = tpu.matmul %2, %3, %cst {dimension_numbers = #tpu.dot_dimension_numbers<[1], [0], [0], [1], [0, 0, 1, 1], [], []>} : vector<16x1024xbf16>, vector<1024x512xbf16>, vector<16x512xf32> -> vector<16x512xf32>
    %5 = vector.broadcast %0 : vector<1x512xf32> to vector<16x512xf32>
    %6 = arith.addf %4, %5 : vector<16x512xf32>
    %c0_5 = arith.constant 0 : index
    %c0_6 = arith.constant 0 : index
    %7 = vector.load %arg2[%c0_5, %c0_6] : memref<16x4xf32, #tpu.memory_space<vmem>>, vector<16x4xf32>
    %8 = vector.extract_strided_slice %7 {offsets = [0, 0], sizes = [16, 1], strides = [1, 1]} : vector<16x4xf32> to vector<16x1xf32>
    %9 = vector.extract_strided_slice %7 {offsets = [0, 1], sizes = [16, 1], strides = [1, 1]} : vector<16x4xf32> to vector<16x1xf32>
    %10 = vector.extract_strided_slice %7 {offsets = [0, 2], sizes = [16, 1], strides = [1, 1]} : vector<16x4xf32> to vector<16x1xf32>
    %11 = vector.extract_strided_slice %7 {offsets = [0, 3], sizes = [16, 1], strides = [1, 1]} : vector<16x4xf32> to vector<16x1xf32>
    %c0_7 = arith.constant 0 : index
    %c0_8 = arith.constant 0 : index
    %12 = vector.load %arg6[%c0_7, %c0_8] : memref<8x256xf32, #tpu.memory_space<vmem>>, vector<1x256xf32>
    %13 = vector.broadcast %8 : vector<16x1xf32> to vector<16x256xf32>
    %14 = vector.broadcast %12 : vector<1x256xf32> to vector<16x256xf32>
    %15 = arith.mulf %13, %14 : vector<16x256xf32>
    %c1 = arith.constant 1 : index
    %c0_9 = arith.constant 0 : index
    %16 = vector.load %arg6[%c1, %c0_9] : memref<8x256xf32, #tpu.memory_space<vmem>>, vector<1x256xf32>
    %17 = vector.broadcast %16 : vector<1x256xf32> to vector<16x256xf32>
    %18 = arith.addf %15, %17 : vector<16x256xf32>
    %cst_10 = arith.constant 0.000000e+00 : f32
    %19 = vector.broadcast %cst_10 : f32 to vector<16x256xf32>
    %20 = arith.cmpf ogt, %18, %19 : vector<16x256xf32>
    %cst_11 = arith.constant 0.00999999977 : f32
    %21 = vector.broadcast %cst_11 : f32 to vector<16x256xf32>
    %22 = arith.mulf %21, %18 : vector<16x256xf32>
    %23 = arith.select %20, %18, %22 : vector<16x256xi1>, vector<16x256xf32>
    %c2 = arith.constant 2 : index
    %c0_12 = arith.constant 0 : index
    %24 = vector.load %arg6[%c2, %c0_12] : memref<8x256xf32, #tpu.memory_space<vmem>>, vector<1x256xf32>
    %25 = vector.broadcast %9 : vector<16x1xf32> to vector<16x256xf32>
    %26 = vector.broadcast %24 : vector<1x256xf32> to vector<16x256xf32>
    %27 = arith.mulf %25, %26 : vector<16x256xf32>
    %c3 = arith.constant 3 : index
    %c0_13 = arith.constant 0 : index
    %28 = vector.load %arg6[%c3, %c0_13] : memref<8x256xf32, #tpu.memory_space<vmem>>, vector<1x256xf32>
    %29 = vector.broadcast %28 : vector<1x256xf32> to vector<16x256xf32>
    %30 = arith.addf %27, %29 : vector<16x256xf32>
    %cst_14 = arith.constant 0.000000e+00 : f32
    %31 = vector.broadcast %cst_14 : f32 to vector<16x256xf32>
    %32 = arith.cmpf ogt, %30, %31 : vector<16x256xf32>
    %cst_15 = arith.constant 0.00999999977 : f32
    %33 = vector.broadcast %cst_15 : f32 to vector<16x256xf32>
    %34 = arith.mulf %33, %30 : vector<16x256xf32>
    %35 = arith.select %32, %30, %34 : vector<16x256xi1>, vector<16x256xf32>
    %c4 = arith.constant 4 : index
    %c0_16 = arith.constant 0 : index
    %36 = vector.load %arg6[%c4, %c0_16] : memref<8x256xf32, #tpu.memory_space<vmem>>, vector<1x256xf32>
    %37 = vector.broadcast %10 : vector<16x1xf32> to vector<16x256xf32>
    %38 = vector.broadcast %36 : vector<1x256xf32> to vector<16x256xf32>
    %39 = arith.mulf %37, %38 : vector<16x256xf32>
    %c5 = arith.constant 5 : index
    %c0_17 = arith.constant 0 : index
    %40 = vector.load %arg6[%c5, %c0_17] : memref<8x256xf32, #tpu.memory_space<vmem>>, vector<1x256xf32>
    %41 = vector.broadcast %11 : vector<16x1xf32> to vector<16x256xf32>
    %42 = vector.broadcast %40 : vector<1x256xf32> to vector<16x256xf32>
    %43 = arith.mulf %41, %42 : vector<16x256xf32>
    %44 = arith.addf %39, %43 : vector<16x256xf32>
    %c6 = arith.constant 6 : index
    %c0_18 = arith.constant 0 : index
    %45 = vector.load %arg6[%c6, %c0_18] : memref<8x256xf32, #tpu.memory_space<vmem>>, vector<1x256xf32>
    %46 = vector.broadcast %45 : vector<1x256xf32> to vector<16x256xf32>
    %47 = arith.addf %44, %46 : vector<16x256xf32>
    %cst_19 = arith.constant 0.000000e+00 : f32
    %48 = vector.broadcast %cst_19 : f32 to vector<16x256xf32>
    %49 = arith.cmpf ogt, %47, %48 : vector<16x256xf32>
    %cst_20 = arith.constant 0.00999999977 : f32
    %50 = vector.broadcast %cst_20 : f32 to vector<16x256xf32>
    %51 = arith.mulf %50, %47 : vector<16x256xf32>
    %52 = arith.select %49, %47, %51 : vector<16x256xi1>, vector<16x256xf32>
    %c1_21 = arith.constant 1 : index
    %c0_22 = arith.constant 0 : index
    %53 = vector.load %arg7[%c1_21, %c0_22] : memref<8x512xf32, #tpu.memory_space<vmem>>, vector<1x128xf32>
    %54 = arith.truncf %6 : vector<16x512xf32> to vector<16x512xbf16>
    %c0_23 = arith.constant 0 : index
    %c0_24 = arith.constant 0 : index
    %55 = vector.load %arg4[%c0_23, %c0_24] : memref<1280x128xbf16, #tpu.memory_space<vmem>>, vector<512x128xbf16>
    %cst_25 = arith.constant dense<0.000000e+00> : vector<16x128xf32>
    %56 = tpu.matmul %54, %55, %cst_25 {dimension_numbers = #tpu.dot_dimension_numbers<[1], [0], [0], [1], [0, 0, 1, 1], [], []>} : vector<16x512xbf16>, vector<512x128xbf16>, vector<16x128xf32> -> vector<16x128xf32>
    %57 = arith.truncf %23 : vector<16x256xf32> to vector<16x256xbf16>
    %c512 = arith.constant 512 : index
    %c0_26 = arith.constant 0 : index
    %58 = vector.load %arg4[%c512, %c0_26] : memref<1280x128xbf16, #tpu.memory_space<vmem>>, vector<256x128xbf16>
    %cst_27 = arith.constant dense<0.000000e+00> : vector<16x128xf32>
    %59 = tpu.matmul %57, %58, %cst_27 {dimension_numbers = #tpu.dot_dimension_numbers<[1], [0], [0], [1], [0, 0, 1, 1], [], []>} : vector<16x256xbf16>, vector<256x128xbf16>, vector<16x128xf32> -> vector<16x128xf32>
    %60 = arith.addf %56, %59 : vector<16x128xf32>
    %61 = arith.truncf %35 : vector<16x256xf32> to vector<16x256xbf16>
    %c768 = arith.constant 768 : index
    %c0_28 = arith.constant 0 : index
    %62 = vector.load %arg4[%c768, %c0_28] : memref<1280x128xbf16, #tpu.memory_space<vmem>>, vector<256x128xbf16>
    %cst_29 = arith.constant dense<0.000000e+00> : vector<16x128xf32>
    %63 = tpu.matmul %61, %62, %cst_29 {dimension_numbers = #tpu.dot_dimension_numbers<[1], [0], [0], [1], [0, 0, 1, 1], [], []>} : vector<16x256xbf16>, vector<256x128xbf16>, vector<16x128xf32> -> vector<16x128xf32>
    %64 = arith.addf %60, %63 : vector<16x128xf32>
    %65 = arith.truncf %52 : vector<16x256xf32> to vector<16x256xbf16>
    %c1024 = arith.constant 1024 : index
    %c0_30 = arith.constant 0 : index
    %66 = vector.load %arg4[%c1024, %c0_30] : memref<1280x128xbf16, #tpu.memory_space<vmem>>, vector<256x128xbf16>
    %cst_31 = arith.constant dense<0.000000e+00> : vector<16x128xf32>
    %67 = tpu.matmul %65, %66, %cst_31 {dimension_numbers = #tpu.dot_dimension_numbers<[1], [0], [0], [1], [0, 0, 1, 1], [], []>} : vector<16x256xbf16>, vector<256x128xbf16>, vector<16x128xf32> -> vector<16x128xf32>
    %68 = arith.addf %64, %67 : vector<16x128xf32>
    %69 = vector.broadcast %53 : vector<1x128xf32> to vector<16x128xf32>
    %70 = arith.addf %68, %69 : vector<16x128xf32>
    %cst_32 = arith.constant 0.000000e+00 : f32
    %71 = vector.broadcast %cst_32 : f32 to vector<16x128xf32>
    %72 = arith.maximumf %70, %71 : vector<16x128xf32>
    %c2_33 = arith.constant 2 : index
    %c0_34 = arith.constant 0 : index
    %73 = vector.load %arg7[%c2_33, %c0_34] : memref<8x512xf32, #tpu.memory_space<vmem>>, vector<1x64xf32>
    %74 = arith.truncf %72 : vector<16x128xf32> to vector<16x128xbf16>
    %c0_35 = arith.constant 0 : index
    %c0_36 = arith.constant 0 : index
    %75 = vector.load %arg5[%c0_35, %c0_36] : memref<128x64xbf16, #tpu.memory_space<vmem>>, vector<128x64xbf16>
    %cst_37 = arith.constant dense<0.000000e+00> : vector<16x64xf32>
    %76 = tpu.matmul %74, %75, %cst_37 {dimension_numbers = #tpu.dot_dimension_numbers<[1], [0], [0], [1], [0, 0, 1, 1], [], []>} : vector<16x128xbf16>, vector<128x64xbf16>, vector<16x64xf32> -> vector<16x64xf32>
    %77 = vector.broadcast %73 : vector<1x64xf32> to vector<16x64xf32>
    %78 = arith.addf %76, %77 : vector<16x64xf32>
    %cst_38 = arith.constant 0.000000e+00 : f32
    %79 = vector.broadcast %cst_38 : f32 to vector<16x64xf32>
    %80 = arith.maximumf %78, %79 : vector<16x64xf32>
    %c3_39 = arith.constant 3 : index
    %c0_40 = arith.constant 0 : index
    %81 = vector.load %arg7[%c3_39, %c0_40] : memref<8x512xf32, #tpu.memory_space<vmem>>, vector<1x64xf32>
    %c4_41 = arith.constant 4 : index
    %c0_42 = arith.constant 0 : index
    %82 = vector.load %arg7[%c4_41, %c0_42] : memref<8x512xf32, #tpu.memory_space<vmem>>, vector<1x1xf32>
    %83 = vector.broadcast %81 : vector<1x64xf32> to vector<16x64xf32>
    %84 = arith.mulf %80, %83 : vector<16x64xf32>
    %cst_43 = arith.constant dense<0.000000e+00> : vector<16xf32>
    %85 = vector.multi_reduction <add>, %84, %cst_43 [1] : vector<16x64xf32> to vector<16xf32>
    %86 = vector.shape_cast %85 : vector<16xf32> to vector<16x1xf32>
    %87 = vector.broadcast %82 : vector<1x1xf32> to vector<16x1xf32>
    %88 = arith.addf %86, %87 : vector<16x1xf32>
    %c0_44 = arith.constant 0 : index
    %c0_45 = arith.constant 0 : index
    %89 = vector.load %arg8[%c0_44, %c0_45] : memref<16x1xf32, #tpu.memory_space<vmem>>, vector<16x1xf32>
    tpu.vector_store %arg8[%c0_44, %c0_45], %88 {strides = array<i32>} : memref<16x1xf32, #tpu.memory_space<vmem>>, vector<16x1xf32>,
    return
  }
  func.func @transform_0(%arg0: i32) -> (i32, i32) {
    %c0_i32 = arith.constant 0 : i32
    %c0_i32_0 = arith.constant 0 : i32
    return %arg0, %c0_i32 : i32, i32
  }
  func.func @transform_1(%arg0: i32) -> (i32, i32) {
    %c0_i32 = arith.constant 0 : i32
    %c0_i32_0 = arith.constant 0 : i32
    return %arg0, %c0_i32 : i32, i32
  }
  func.func @transform_2(%arg0: i32) -> (i32, i32) {
    %c0_i32 = arith.constant 0 : i32
    %c0_i32_0 = arith.constant 0 : i32
    %c0_i32_1 = arith.constant 0 : i32
    return %c0_i32, %c0_i32_0 : i32, i32
  }
  func.func @transform_3(%arg0: i32) -> (i32, i32) {
    %c0_i32 = arith.constant 0 : i32
    %c0_i32_0 = arith.constant 0 : i32
    %c0_i32_1 = arith.constant 0 : i32
    return %c0_i32, %c0_i32_0 : i32, i32
  }
  func.func @transform_4(%arg0: i32) -> (i32, i32) {
    %c0_i32 = arith.constant 0 : i32
    %c0_i32_0 = arith.constant 0 : i32
    %c0_i32_1 = arith.constant 0 : i32
    return %c0_i32, %c0_i32_0 : i32, i32
  }
  func.func @transform_5(%arg0: i32) -> (i32, i32) {
    %c0_i32 = arith.constant 0 : i32
    %c0_i32_0 = arith.constant 0 : i32
    %c0_i32_1 = arith.constant 0 : i32
    return %c0_i32, %c0_i32_0 : i32, i32
  }
  func.func @transform_6(%arg0: i32) -> (i32, i32) {
    %c0_i32 = arith.constant 0 : i32
    %c0_i32_0 = arith.constant 0 : i32
    %c0_i32_1 = arith.constant 0 : i32
    return %c0_i32, %c0_i32_0 : i32, i32
  }
  func.func @transform_7(%arg0: i32) -> (i32, i32) {
    %c0_i32 = arith.constant 0 : i32
    %c0_i32_0 = arith.constant 0 : i32
    return %arg0, %c0_i32 : i32, i32
  }
}

</mosaic_0001>

<bundles_post_ra>
// kernel: critic_forward.1
= control target key start
LH: loop header
LB: loop body
LE: loop exit
PB: predicated region body
PF: predicated region fallthrough
CT: control target
= control target key end

     0   :  { %12 = vsyncpa [#allocation3], 0  ;;  %s4610_s24 = smov 0   ;;  %s5085_s0 = inlined_call_operand.vmem [shape: f32[32,1024], index: 0, kind: input, shape index: {}]   ;;  %s5086_s1 = inlined_call_operand.vmem [shape: f32[32,4], index: 1, kind: input, shape index: {}]   ;;  %s5087_s2 = inlined_call_operand.hbm [shape: bf16[1024,512], index: 2, kind: input, shape index: {}]   ;;  %s5088_s3 = inlined_call_operand.vmem [shape: bf16[1280,128], index: 3, kind: input, shape index: {}]   ;;  %s5089_s4 = inlined_call_operand.vmem [shape: bf16[128,64], index: 4, kind: input, shape index: {}]   ;;  %s5090_s5 = inlined_call_operand.vmem [shape: f32[8,256], index: 5, kind: input, shape index: {}]   ;;  %s5091_s6 = inlined_call_operand.vmem [shape: f32[8,512], index: 6, kind: input, shape index: {}]   ;;  %s5092_s7 = inlined_call_operand.vmem [shape: f32[32,1], index: 7, kind: output, shape index: {}]  }
   0x1 LB: > { %s3512_s25 = sadd.s32 4294967295, %s4559_s24   ;;  %p3514_p0 = scmp.ge.s32.totalorder %s4559_s24, 1  ;;  %s4559_s24 = sphi %s4610_s24, %s18_s24  }
   0x2   : > { %p206_p1 = scmp.lt.s32.totalorder %s4559_s24, 3  ;;  %s4561_s26 = smov [#allocation2]  }
   0x3   : > { %s218_s27 = sshll.u32 %s4561_s26, 4  ;;  %p4624_p3 = scmp.eq.s32.totalorder %s3512_s25, 0  ;;  %s219_s27 = int_to_ptr.vmem [resolvable:$true] %s218_s27 }
   0x4   : > { %p4618_p2 = pnand %p3514_p0, %p206_p1  ;;  %s4534_s30 = scalar_lea.vmem %s219_s27, 32768 }
   0x5   : > { %p4535_p7 = scmp.ne.s32.totalorder %s219_s27, %s4534_s30  ;;  %p4542_p10 = scmp.lt.s32.totalorder %s219_s27, %s219_s27 }
   0x6   : > { %p4022_p4 = pneg %p4618_p2  ;;  %p4543_p11 = scmp.lt.s32.totalorder %s4534_s30, %s4534_s30 }
   0x8   : > { %p4023_p5 = pnand %p4624_p3, %p4022_p4  ;;  %p4544_p12 = por %p4543_p11, %p4542_p10 }
   0xa   : > { %p4525_p6 = pneg %p4023_p5 }
   0xc   : > { %p4537_p8 = pnand %p4535_p7, %p4525_p6 }
   0xe   : > { %p4538_p9 = pneg %p4537_p8 }
  0x10   : > { %p4545_p13 = pnand %p4544_p12, %p4538_p9 }
  0x12   : > { %4548 = shalt.err (!%p4545_p13)
}
  0x13   : > { %s4562_s8 = smov 256   ;;  %s4563_s9 = smov 16  }
  0x14   : > { %4025 = dma.hbm_to_vmem [thread:$0]  (!%p4023_p5), %s5087_s2, 32768, %s219_s27, [#allocation3], %s4562_s8, %s4562_s8, %s4563_s9  }
  0x15   : > { %265 = sbr.rel (%p4618_p2) target bundleno = 1076 (0x434), region = 48 }
  0x1a   : > { %4554 = dma.done.wait (%p4624_p3), [#allocation3], 32768  }
  0x1b   : > { %4556 = vsyncadd (%p4624_p3), [#allocation3], 4294934528  ;;  %v4051_v0 = vld [vmem:[#allocation2 + $0xe4] ss:$16 sps:$4 sm:$0xff]   ;;  %v4055_v2 = vld [vmem:[#allocation2 + $0xe0] ss:$16 sps:$4 sm:$0xff]  }
  0x1c   : > { %v4053_v1 = vld [vmem:[#allocation2 + $0x2e4] ss:$16 sps:$4 sm:$0xff]   ;;  %1905 = vmatprep.subr.bf16.mxu0 %v4051_v0  ;;  %v4056_v3 = vld [vmem:[#allocation2 + $0x2e0] ss:$16 sps:$4 sm:$0xff]   ;;  %s3519_s12 = sshll.u32 %s3512_s25, 1  ;;  %vm4569_vm12 = vmmov 0  }
  0x1d   : > { %1948 = vmatprep.subr.bf16.mxu1 %v4053_v1  ;;  %v4057_v4 = vld [vmem:[#allocation2 + $0xc4] ss:$16 sps:$4 sm:$0xff]   ;;  %1906 = vmatpush1.bf16.msra.mxu0 %v4055_v2  ;;  %v4061_v6 = vld [vmem:[#allocation2 + $0xc0] ss:$16 sps:$4 sm:$0xff]   ;;  %p304_p0 = scmp.lt.s32.totalorder %s3519_s12, 3  ;;  %vm3420_vm13 = vcmask 523264  }
  0x1e   : > { %1949 = vmatpush1.bf16.msra.mxu1 %v4056_v3  ;;  %v4059_v5 = vld [vmem:[#allocation2 + $0x2c4] ss:$16 sps:$4 sm:$0xff]   ;;  %1907 = vmatprep.subr.bf16.mxu0 %v4057_v4  ;;  %v4062_v7 = vld [vmem:[#allocation2 + $0x2c0] ss:$16 sps:$4 sm:$0xff]   ;;  %vm3429_vm14 = vcmask 7168  }
  0x1f   : > { %1950 = vmatprep.subr.bf16.mxu1 %v4059_v5  ;;  %v4063_v8 = vld [vmem:[#allocation2 + $0xa4] ss:$16 sps:$4 sm:$0xff]   ;;  %v4067_v10 = vld [vmem:[#allocation2 + $0xa0] ss:$16 sps:$4 sm:$0xff]   ;;  %s5096_s12 = smov (!%p304_p0, %s3519_s12), 3 }
  0x20   : > { %v4065_v9 = vld [vmem:[#allocation2 + $0x2a4] ss:$16 sps:$4 sm:$0xff]   ;;  %v4068_v11 = vld [vmem:[#allocation2 + $0x2a0] ss:$16 sps:$4 sm:$0xff]   ;;  %s3878_s13 = sshll.u32 %s5096_s12, 6  ;;  %s3523_s17 = sshll.u32 %s5096_s12, 3 }
  0x21   : > { %1908 = vmatpush1.bf16.msra.mxu0 %v4061_v6  ;;  %v4069_v12 = vld [vmem:[#allocation2 + $0x84] ss:$16 sps:$4 sm:$0xff]   ;;  %v4073_v14 = vld [vmem:[#allocation2 + $0x80] ss:$16 sps:$4 sm:$0xff]   ;;  %s4649_s16 = scalar_lea.vmem %s5085_s0, %s3878_s13  ;;  %s314_s20 = scalar_lea.vmem %s5086_s1, %s3523_s17 }
  0x22   : > { %1951 = vmatpush1.bf16.msra.mxu1 %v4062_v7  ;;  %1909 = vmatprep.subr.bf16.mxu0 %v4063_v8  ;;  %v4071_v13 = vld [vmem:[#allocation2 + $0x284] ss:$16 sps:$4 sm:$0xff]   ;;  %v4074_v15 = vld [vmem:[#allocation2 + $0x280] ss:$16 sps:$4 sm:$0xff]   ;;  %v325_v46 = vld [vmem:[%s4649_s16 + $0x8] sm:$0xff]  ;;  %s320_s23 = scalar_lea.vmem %s5092_s7, %s3523_s17 }
  0x23   : > { %1952 = vmatprep.subr.bf16.mxu1 %v4065_v9  ;;  %v4075_v16 = vld [vmem:[#allocation2 + $0x64] ss:$16 sps:$4 sm:$0xff]   ;;  %v4079_v18 = vld [vmem:[#allocation2 + $0x60] ss:$16 sps:$4 sm:$0xff]   ;;  %v333_v47 = vld [vmem:[%s4649_s16 + $0x48] sm:$0xff] }
  0x24   : > { %v4077_v17 = vld [vmem:[#allocation2 + $0x264] ss:$16 sps:$4 sm:$0xff]   ;;  %v4080_v19 = vld [vmem:[#allocation2 + $0x260] ss:$16 sps:$4 sm:$0xff]   ;;  %v327_v48 = vld [vmem:[%s4649_s16 + $0x18] sm:$0xff]  ;;  %v4655_v53 = vpack.c.bf16 %v333_v47, %v325_v46 }
  0x25   : > { %1910 = vmatpush1.bf16.msra.mxu0 %v4067_v10  ;;  %v4081_v20 = vld [vmem:[#allocation2 + $0x44] ss:$16 sps:$4 sm:$0xff]   ;;  %v4085_v22 = vld [vmem:[#allocation2 + $0x40] ss:$16 sps:$4 sm:$0xff]   ;;  %v335_v49 = vld [vmem:[%s4649_s16 + $0x58] sm:$0xff] }
  0x26   : > { %1953 = vmatpush1.bf16.msra.mxu1 %v4068_v11  ;;  %1911 = vmatprep.subr.bf16.mxu0 %v4069_v12  ;;  %v4083_v21 = vld [vmem:[#allocation2 + $0x244] ss:$16 sps:$4 sm:$0xff]   ;;  %v4086_v23 = vld [vmem:[#allocation2 + $0x240] ss:$16 sps:$4 sm:$0xff]   ;;  %v4657_v54 = vpack.c.bf16 %v335_v49, %v327_v48  ;;  %v339_v47 = vld [vmem:[%s4649_s16 + $0x78] sm:$0xff] }
  0x27   : > { %1954 = vmatprep.subr.bf16.mxu1 %v4071_v13  ;;  %v4087_v24 = vld [vmem:[#allocation2 + $0x24] ss:$16 sps:$4 sm:$0xff]   ;;  %v4091_v26 = vld [vmem:[#allocation2 + $0x20] ss:$16 sps:$4 sm:$0xff]   ;;  %1937 = vmatprep.mubr.bf16.mxu0 %v4655_v53 }
  0x28   : > { %v4089_v25 = vld [vmem:[#allocation2 + $0x224] ss:$16 sps:$4 sm:$0xff]   ;;  %v4092_v27 = vld [vmem:[#allocation2 + $0x220] ss:$16 sps:$4 sm:$0xff]   ;;  %1980 = vmatprep.mubr.bf16.mxu1 %v4657_v54 }
  0x29   : > { %1912 = vmatpush1.bf16.msra.mxu0 %v4073_v14  ;;  %v4093_v28 = vld [vmem:[#allocation2 + $0x4] ss:$16 sps:$4 sm:$0xff]   ;;  %v4097_v30 = vld [vmem:[#allocation2] ss:$16 sps:$4 sm:$0xff]  }
  0x2a   : > { %1955 = vmatpush1.bf16.msra.mxu1 %v4074_v15  ;;  %1913 = vmatprep.subr.bf16.mxu0 %v4075_v16  ;;  %v4095_v29 = vld [vmem:[#allocation2 + $0x204] ss:$16 sps:$4 sm:$0xff]   ;;  %v4098_v31 = vld [vmem:[#allocation2 + $0x200] ss:$16 sps:$4 sm:$0xff]  }
  0x2b   : > { %1956 = vmatprep.subr.bf16.mxu1 %v4077_v17  ;;  %v4099_v32 = vld [vmem:[#allocation2 + $0x1e4] ss:$16 sps:$4 sm:$0xff]   ;;  %v4103_v34 = vld [vmem:[#allocation2 + $0x1e0] ss:$16 sps:$4 sm:$0xff]  }
  0x2c   : > { %v4101_v33 = vld [vmem:[#allocation2 + $0x3e4] ss:$16 sps:$4 sm:$0xff]   ;;  %v4104_v35 = vld [vmem:[#allocation2 + $0x3e0] ss:$16 sps:$4 sm:$0xff]  }
  0x2d   : > { %1914 = vmatpush1.bf16.msra.mxu0 %v4079_v18  ;;  %v4105_v36 = vld [vmem:[#allocation2 + $0x1c4] ss:$16 sps:$4 sm:$0xff]   ;;  %v4109_v38 = vld [vmem:[#allocation2 + $0x1c0] ss:$16 sps:$4 sm:$0xff]  }
  0x2e   : > { %1957 = vmatpush1.bf16.msra.mxu1 %v4080_v19  ;;  %1915 = vmatprep.subr.bf16.mxu0 %v4081_v20  ;;  %v4107_v37 = vld [vmem:[#allocation2 + $0x3c4] ss:$16 sps:$4 sm:$0xff]   ;;  %v4110_v39 = vld [vmem:[#allocation2 + $0x3c0] ss:$16 sps:$4 sm:$0xff]  }
  0x2f   : > { %1958 = vmatprep.subr.bf16.mxu1 %v4083_v21  ;;  %v4111_v40 = vld [vmem:[#allocation2 + $0x1a4] ss:$16 sps:$4 sm:$0xff]   ;;  %v4115_v42 = vld [vmem:[#allocation2 + $0x1a0] ss:$16 sps:$4 sm:$0xff]  }
  0x30   : > { %v4113_v41 = vld [vmem:[#allocation2 + $0x3a4] ss:$16 sps:$4 sm:$0xff]   ;;  %v4116_v43 = vld [vmem:[#allocation2 + $0x3a0] ss:$16 sps:$4 sm:$0xff]  }
  0x31   : > { %1916 = vmatpush1.bf16.msra.mxu0 %v4085_v22  ;;  %v4117_v44 = vld [vmem:[#allocation2 + $0x184] ss:$16 sps:$4 sm:$0xff]   ;;  %v4121_v50 = vld [vmem:[#allocation2 + $0x180] ss:$16 sps:$4 sm:$0xff]   ;;  %v4564_v22 = vmov 0  }
  0x32   : > { %1959 = vmatpush1.bf16.msra.mxu1 %v4086_v23  ;;  %1917 = vmatprep.subr.bf16.mxu0 %v4087_v24  ;;  %v4119_v45 = vld [vmem:[#allocation2 + $0x384] ss:$16 sps:$4 sm:$0xff]   ;;  %v4122_v51 = vld [vmem:[#allocation2 + $0x380] ss:$16 sps:$4 sm:$0xff]  }
  0x33   : > { %1960 = vmatprep.subr.bf16.mxu1 %v4089_v25  ;;  %v4123_v52 = vld [vmem:[#allocation2 + $0x164] ss:$16 sps:$4 sm:$0xff]   ;;  %v4127_v56 = vld [vmem:[#allocation2 + $0x160] ss:$16 sps:$4 sm:$0xff]   ;;  %4045 = vset.pattern.permute.xlu0 %v4564_v22 }
  0x34   : > { %v4125_v55 = vld [vmem:[#allocation2 + $0x364] ss:$16 sps:$4 sm:$0xff]   ;;  %v4128_v57 = vld [vmem:[#allocation2 + $0x360] ss:$16 sps:$4 sm:$0xff]  }
  0x35   : > { %1918 = vmatpush1.bf16.msra.mxu0 %v4091_v26  ;;  %v4129_v58 = vld [vmem:[#allocation2 + $0x144] ss:$16 sps:$4 sm:$0xff]   ;;  %v4133_v60 = vld [vmem:[#allocation2 + $0x140] ss:$16 sps:$4 sm:$0xff]  }
  0x36   : > { %1961 = vmatpush1.bf16.msra.mxu1 %v4092_v27  ;;  %1919 = vmatprep.subr.bf16.mxu0 %v4093_v28  ;;  %v4131_v59 = vld [vmem:[#allocation2 + $0x344] ss:$16 sps:$4 sm:$0xff]   ;;  %v4134_v61 = vld [vmem:[#allocation2 + $0x340] ss:$16 sps:$4 sm:$0xff]  }
  0x37   : > { %1962 = vmatprep.subr.bf16.mxu1 %v4095_v29  ;;  %v4135_v62 = vld [vmem:[#allocation2 + $0x124] ss:$16 sps:$4 sm:$0xff]   ;;  %v4139_v0 = vld [vmem:[#allocation2 + $0x120] ss:$16 sps:$4 sm:$0xff]  }
  0x38   : > { %v4137_v63 = vld [vmem:[#allocation2 + $0x324] ss:$16 sps:$4 sm:$0xff]   ;;  %v4140_v1 = vld [vmem:[#allocation2 + $0x320] ss:$16 sps:$4 sm:$0xff]  }
  0x39   : > { %1920 = vmatpush1.bf16.msra.mxu0 %v4097_v30  ;;  %v4141_v2 = vld [vmem:[#allocation2 + $0x104] ss:$16 sps:$4 sm:$0xff]   ;;  %v4145_v4 = vld [vmem:[#allocation2 + $0x100] ss:$16 sps:$4 sm:$0xff]  }
  0x3a   : > { %1963 = vmatpush1.bf16.msra.mxu1 %v4098_v31  ;;  %1921 = vmatprep.subr.bf16.mxu0 %v4099_v32  ;;  %v4143_v3 = vld [vmem:[#allocation2 + $0x304] ss:$16 sps:$4 sm:$0xff]   ;;  %v4146_v5 = vld [vmem:[#allocation2 + $0x300] ss:$16 sps:$4 sm:$0xff]  }
  0x3b   : > { %1964 = vmatprep.subr.bf16.mxu1 %v4101_v33  ;;  %v324_v6 = vld [vmem:[%s4649_s16] sm:$0xff]  ;;  %v326_v8 = vld [vmem:[%s4649_s16 + $0x10] sm:$0xff] }
  0x3c   : > { %v332_v7 = vld [vmem:[%s4649_s16 + $0x40] sm:$0xff]  ;;  %v334_v9 = vld [vmem:[%s4649_s16 + $0x50] sm:$0xff] }
  0x3d   : > { %1922 = vmatpush2.bf16.msra.mxu0 %v4103_v34  ;;  %v4149_v10 = vld [vmem:[#allocation2 + $0x4e4] ss:$16 sps:$4 sm:$0xff]   ;;  %v4665_v12 = vpack.c.bf16 %v332_v7, %v324_v6  ;;  %v4667_v13 = vpack.c.bf16 %v334_v9, %v326_v8  ;;  %v4147_v14 = vld [vmem:[#allocation2 + $0x4e0] ss:$16 sps:$4 sm:$0xff]  }
  0x3e   : > { %1965 = vmatpush2.bf16.msra.mxu1 %v4104_v35  ;;  %1923 = vmatprep.subr.bf16.mxu0 %v4105_v36  ;;  %v4152_v11 = vld [vmem:[#allocation2 + $0x6e4] ss:$16 sps:$4 sm:$0xff]   ;;  %v4150_v15 = vld [vmem:[#allocation2 + $0x6e0] ss:$16 sps:$4 sm:$0xff]  }
  0x3f   : > { %1966 = vmatprep.subr.bf16.mxu1 %v4107_v37  ;;  %v4155_v16 = vld [vmem:[#allocation2 + $0x4c4] ss:$16 sps:$4 sm:$0xff]   ;;  %v4153_v18 = vld [vmem:[#allocation2 + $0x4c0] ss:$16 sps:$4 sm:$0xff]  }
  0x40   : > { %v4158_v17 = vld [vmem:[#allocation2 + $0x6c4] ss:$16 sps:$4 sm:$0xff]   ;;  %v4156_v19 = vld [vmem:[#allocation2 + $0x6c0] ss:$16 sps:$4 sm:$0xff]  }
  0x41   : > { %1924 = vmatpush2.bf16.msra.mxu0 %v4109_v38  ;;  %v4161_v20 = vld [vmem:[#allocation2 + $0x4a4] ss:$16 sps:$4 sm:$0xff]   ;;  %v4159_v23 = vld [vmem:[#allocation2 + $0x4a0] ss:$16 sps:$4 sm:$0xff]  }
  0x42   : > { %1967 = vmatpush2.bf16.msra.mxu1 %v4110_v39  ;;  %1925 = vmatprep.subr.bf16.mxu0 %v4111_v40  ;;  %v4164_v21 = vld [vmem:[#allocation2 + $0x6a4] ss:$16 sps:$4 sm:$0xff]   ;;  %v4162_v24 = vld [vmem:[#allocation2 + $0x6a0] ss:$16 sps:$4 sm:$0xff]  }
  0x43   : > { %1968 = vmatprep.subr.bf16.mxu1 %v4113_v41  ;;  %v4167_v25 = vld [vmem:[#allocation2 + $0x484] ss:$16 sps:$4 sm:$0xff]   ;;  %v4165_v27 = vld [vmem:[#allocation2 + $0x480] ss:$16 sps:$4 sm:$0xff]   ;;  %v329_v41 = vld [vmem:[%s4649_s16 + $0x28] sm:$0xff] }
  0x44   : > { %v4170_v26 = vld [vmem:[#allocation2 + $0x684] ss:$16 sps:$4 sm:$0xff]   ;;  %v4168_v28 = vld [vmem:[#allocation2 + $0x680] ss:$16 sps:$4 sm:$0xff]  }
  0x45   : > { %1926 = vmatpush2.bf16.msra.mxu0 %v4115_v42  ;;  %v4173_v29 = vld [vmem:[#allocation2 + $0x464] ss:$16 sps:$4 sm:$0xff]   ;;  %v4171_v31 = vld [vmem:[#allocation2 + $0x460] ss:$16 sps:$4 sm:$0xff]   ;;  %v337_v42 = vld [vmem:[%s4649_s16 + $0x68] sm:$0xff] }
  0x46   : > { %1969 = vmatpush2.bf16.msra.mxu1 %v4116_v43  ;;  %1927 = vmatprep.subr.bf16.mxu0 %v4117_v44  ;;  %v4176_v30 = vld [vmem:[#allocation2 + $0x664] ss:$16 sps:$4 sm:$0xff]   ;;  %v4174_v32 = vld [vmem:[#allocation2 + $0x660] ss:$16 sps:$4 sm:$0xff]   ;;  %v331_v43 = vld [vmem:[%s4649_s16 + $0x38] sm:$0xff]  ;;  %v4674_v46 = vpack.c.bf16 %v337_v42, %v329_v41 }
  0x47   : > { %1970 = vmatprep.subr.bf16.mxu1 %v4119_v45  ;;  %v4179_v33 = vld [vmem:[#allocation2 + $0x444] ss:$16 sps:$4 sm:$0xff]   ;;  %v4177_v35 = vld [vmem:[#allocation2 + $0x440] ss:$16 sps:$4 sm:$0xff]   ;;  %v4677_v48 = vpack.c.bf16 %v339_v47, %v331_v43  ;;  %v4263_v42 = vld [vmem:[#allocation2 + $0x8c] ss:$16 sps:$4 sm:$0xff]  }
  0x48   : > { %v4182_v34 = vld [vmem:[#allocation2 + $0x644] ss:$16 sps:$4 sm:$0xff]   ;;  %v4180_v36 = vld [vmem:[#allocation2 + $0x640] ss:$16 sps:$4 sm:$0xff]   ;;  %v4266_v43 = vld [vmem:[#allocation2 + $0x28c] ss:$16 sps:$4 sm:$0xff]  }
  0x49   : > { %1928 = vmatpush2.bf16.msra.mxu0 %v4121_v50  ;;  %v4185_v37 = vld [vmem:[#allocation2 + $0x424] ss:$16 sps:$4 sm:$0xff]   ;;  %v4183_v39 = vld [vmem:[#allocation2 + $0x420] ss:$16 sps:$4 sm:$0xff]   ;;  %v4272_v47 = vld [vmem:[#allocation2 + $0x26c] ss:$16 sps:$4 sm:$0xff]  }
  0x4a   : > { %1971 = vmatpush2.bf16.msra.mxu1 %v4122_v51  ;;  %1929 = vmatprep.subr.bf16.mxu0 %v4123_v52  ;;  %v4188_v38 = vld [vmem:[#allocation2 + $0x624] ss:$16 sps:$4 sm:$0xff]   ;;  %v4186_v40 = vld [vmem:[#allocation2 + $0x620] ss:$16 sps:$4 sm:$0xff]  }
  0x4b   : > { %1972 = vmatprep.subr.bf16.mxu1 %v4125_v55  ;;  %v4191_v44 = vld [vmem:[#allocation2 + $0x404] ss:$16 sps:$4 sm:$0xff]   ;;  %v4189_v49 = vld [vmem:[#allocation2 + $0x400] ss:$16 sps:$4 sm:$0xff]  }
  0x4c   : > { %v4194_v45 = vld [vmem:[#allocation2 + $0x604] ss:$16 sps:$4 sm:$0xff]   ;;  %v4192_v50 = vld [vmem:[#allocation2 + $0x600] ss:$16 sps:$4 sm:$0xff]  }
  0x4d   : > { %1930 = vmatpush2.bf16.msra.mxu0 %v4127_v56  ;;  %v4197_v51 = vld [vmem:[#allocation2 + $0x5e4] ss:$16 sps:$4 sm:$0xff]   ;;  %v4195_v55 = vld [vmem:[#allocation2 + $0x5e0] ss:$16 sps:$4 sm:$0xff]  }
  0x4e   : > { %1973 = vmatpush2.bf16.msra.mxu1 %v4128_v57  ;;  %1931 = vmatprep.subr.bf16.mxu0 %v4129_v58  ;;  %v4200_v52 = vld [vmem:[#allocation2 + $0x7e4] ss:$16 sps:$4 sm:$0xff]   ;;  %v4198_v56 = vld [vmem:[#allocation2 + $0x7e0] ss:$16 sps:$4 sm:$0xff]  }
  0x4f   : > { %1974 = vmatprep.subr.bf16.mxu1 %v4131_v59  ;;  %v4203_v57 = vld [vmem:[#allocation2 + $0x5c4] ss:$16 sps:$4 sm:$0xff]   ;;  %v4201_v59 = vld [vmem:[#allocation2 + $0x5c0] ss:$16 sps:$4 sm:$0xff]  }
  0x50   : > { %v4206_v58 = vld [vmem:[#allocation2 + $0x7c4] ss:$16 sps:$4 sm:$0xff]   ;;  %v4219_v7 = vld [vmem:[#allocation2 + $0x560] ss:$16 sps:$4 sm:$0xff]  }
  0x51   : > { %1932 = vmatpush2.bf16.msra.mxu0 %v4133_v60  ;;  %v4204_v60 = vld [vmem:[#allocation2 + $0x7c0] ss:$16 sps:$4 sm:$0xff]   ;;  %v4224_v6 = vld [vmem:[#allocation2 + $0x764] ss:$16 sps:$4 sm:$0xff]  }
  0x52   : > { %1975 = vmatpush2.bf16.msra.mxu1 %v4134_v61  ;;  %1933 = vmatprep.subr.bf16.mxu0 %v4135_v62  ;;  %v4209_v61 = vld [vmem:[#allocation2 + $0x5a4] ss:$16 sps:$4 sm:$0xff]   ;;  %v4222_v8 = vld [vmem:[#allocation2 + $0x760] ss:$16 sps:$4 sm:$0xff]  }
  0x53   : > { %1976 = vmatprep.subr.bf16.mxu1 %v4137_v63  ;;  %v4212_v62 = vld [vmem:[#allocation2 + $0x7a4] ss:$16 sps:$4 sm:$0xff]   ;;  %v4207_v63 = vld [vmem:[#allocation2 + $0x5a0] ss:$16 sps:$4 sm:$0xff]  }
  0x54   : > { %v4227_v9 = vld [vmem:[#allocation2 + $0x544] ss:$16 sps:$4 sm:$0xff]   ;;  %v4240_v22 = vld [vmem:[#allocation2 + $0x700] ss:$16 sps:$4 sm:$0xff]  }
  0x55   : > { %1934 = vmatpush2.bf16.msra.mxu0 %v4139_v0  ;;  %v4210_v0 = vld [vmem:[#allocation2 + $0x7a0] ss:$16 sps:$4 sm:$0xff]  }
  0x56   : > { %1977 = vmatpush2.bf16.msra.mxu1 %v4140_v1  ;;  %1935 = vmatprep.subr.bf16.mxu0 %v4141_v2  ;;  %v4215_v1 = vld [vmem:[#allocation2 + $0x584] ss:$16 sps:$4 sm:$0xff]  }
  0x57   : > { %1978 = vmatprep.subr.bf16.mxu1 %v4143_v3  ;;  %v4218_v2 = vld [vmem:[#allocation2 + $0x784] ss:$16 sps:$4 sm:$0xff]   ;;  %v4213_v3 = vld [vmem:[#allocation2 + $0x580] ss:$16 sps:$4 sm:$0xff]  }
  0x58   : > { %v4699_v41 = vld [vmem:[%s314_s20] sm:$0xff] }
  0x59   : > { %1936 = vmatpush2.bf16.msra.mxu0 %v4145_v4  ;;  %v4216_v4 = vld [vmem:[#allocation2 + $0x780] ss:$16 sps:$4 sm:$0xff]   ;;  %2254 = vperm.xlu0 %4045, %v4699_v41  }
  0x5a   : > { %1979 = vmatpush2.bf16.msra.mxu1 %v4146_v5  ;;  %1991 = vmatprep.subr.bf16.mxu0 %v4149_v10  ;;  %v4221_v5 = vld [vmem:[#allocation2 + $0x564] ss:$16 sps:$4 sm:$0xff]  }
  0x5b   : > { %2034 = vmatprep.subr.bf16.mxu1 %v4152_v11  ;;  %v4230_v10 = vld [vmem:[#allocation2 + $0x744] ss:$16 sps:$4 sm:$0xff]   ;;  %v4225_v11 = vld [vmem:[#allocation2 + $0x540] ss:$16 sps:$4 sm:$0xff]  }
  0x5c   : > { %1938 = vmatmul.mubr.bf16.vlgmr.msra.gmra.mxu0 %v4665_v12 }
  0x5d   : > { %1981 = vmatmul.mubr.bf16.vlgmr.msra.gmra.mxu1 %v4667_v13  ;;  %1992 = vmatpush1.bf16.msra.mxu0 %v4147_v14  ;;  %v4228_v14 = vld [vmem:[#allocation2 + $0x740] ss:$16 sps:$4 sm:$0xff]  }
  0x5e   : > { %2035 = vmatpush1.bf16.msra.mxu1 %v4150_v15  ;;  %1993 = vmatprep.subr.bf16.mxu0 %v4155_v16  ;;  %v4233_v15 = vld [vmem:[#allocation2 + $0x524] ss:$16 sps:$4 sm:$0xff]  }
  0x5f   : > { %2036 = vmatprep.subr.bf16.mxu1 %v4158_v17  ;;  %2023 = vmatprep.mubr.bf16.mxu0 %v4674_v46  ;;  %v4236_v16 = vld [vmem:[#allocation2 + $0x724] ss:$16 sps:$4 sm:$0xff]   ;;  %v4231_v17 = vld [vmem:[#allocation2 + $0x520] ss:$16 sps:$4 sm:$0xff]  }
  0x60   : > { %2066 = vmatprep.mubr.bf16.mxu1 %v4677_v48 }
  0x61   : > { %1994 = vmatpush1.bf16.msra.mxu0 %v4153_v18  ;;  %v4234_v18 = vld [vmem:[#allocation2 + $0x720] ss:$16 sps:$4 sm:$0xff]  }
  0x62   : > { %2037 = vmatpush1.bf16.msra.mxu1 %v4156_v19  ;;  %1995 = vmatprep.subr.bf16.mxu0 %v4161_v20  ;;  %v4239_v19 = vld [vmem:[#allocation2 + $0x504] ss:$16 sps:$4 sm:$0xff]  }
  0x63   : > { %2038 = vmatprep.subr.bf16.mxu1 %v4164_v21  ;;  %v4242_v20 = vld [vmem:[#allocation2 + $0x704] ss:$16 sps:$4 sm:$0xff]   ;;  %v4237_v21 = vld [vmem:[#allocation2 + $0x500] ss:$16 sps:$4 sm:$0xff]  }
  0x65   : > { %1996 = vmatpush1.bf16.msra.mxu0 %v4159_v23  ;;  %v328_v23 = vld [vmem:[%s4649_s16 + $0x20] sm:$0xff] }
  0x66   : > { %2039 = vmatpush1.bf16.msra.mxu1 %v4162_v24  ;;  %1997 = vmatprep.subr.bf16.mxu0 %v4167_v25  ;;  %v336_v24 = vld [vmem:[%s4649_s16 + $0x60] sm:$0xff]  ;;  %v330_v25 = vld [vmem:[%s4649_s16 + $0x30] sm:$0xff] }
  0x67   : > { %2040 = vmatprep.subr.bf16.mxu1 %v4170_v26  ;;  %v338_v26 = vld [vmem:[%s4649_s16 + $0x70] sm:$0xff] }
  0x69   : > { %1998 = vmatpush1.bf16.msra.mxu0 %v4165_v27  ;;  %v4245_v27 = vld [vmem:[#allocation2 + $0xec] ss:$16 sps:$4 sm:$0xff]  }
  0x6a   : > { %2041 = vmatpush1.bf16.msra.mxu1 %v4168_v28  ;;  %1999 = vmatprep.subr.bf16.mxu0 %v4173_v29  ;;  %v4248_v28 = vld [vmem:[#allocation2 + $0x2ec] ss:$16 sps:$4 sm:$0xff]   ;;  %v4685_v29 = vpack.c.bf16 %v336_v24, %v328_v23 }
  0x6b   : > { %2042 = vmatprep.subr.bf16.mxu1 %v4176_v30  ;;  %v4687_v30 = vpack.c.bf16 %v338_v26, %v330_v25  ;;  %v4323_v23 = vld [vmem:[#allocation2 + $0x14c] ss:$16 sps:$4 sm:$0xff]   ;;  %v4321_v25 = vld [vmem:[#allocation2 + $0x148] ss:$16 sps:$4 sm:$0xff]  }
  0x6c   : > { %v4326_v24 = vld [vmem:[#allocation2 + $0x34c] ss:$16 sps:$4 sm:$0xff]   ;;  %v4324_v26 = vld [vmem:[#allocation2 + $0x348] ss:$16 sps:$4 sm:$0xff]  }
  0x6d   : > { %2000 = vmatpush1.bf16.msra.mxu0 %v4171_v31  ;;  %v4243_v31 = vld [vmem:[#allocation2 + $0xe8] ss:$16 sps:$4 sm:$0xff]  }
  0x6e   : > { %2043 = vmatpush1.bf16.msra.mxu1 %v4174_v32  ;;  %2001 = vmatprep.subr.bf16.mxu0 %v4179_v33  ;;  %v4246_v32 = vld [vmem:[#allocation2 + $0x2e8] ss:$16 sps:$4 sm:$0xff]   ;;  %v4251_v33 = vld [vmem:[#allocation2 + $0xcc] ss:$16 sps:$4 sm:$0xff]  }
  0x6f   : > { %2044 = vmatprep.subr.bf16.mxu1 %v4182_v34  ;;  %v4254_v34 = vld [vmem:[#allocation2 + $0x2cc] ss:$16 sps:$4 sm:$0xff]  }
  0x71   : > { %2002 = vmatpush1.bf16.msra.mxu0 %v4177_v35  ;;  %v4249_v35 = vld [vmem:[#allocation2 + $0xc8] ss:$16 sps:$4 sm:$0xff]  }
  0x72   : > { %2045 = vmatpush1.bf16.msra.mxu1 %v4180_v36  ;;  %2003 = vmatprep.subr.bf16.mxu0 %v4185_v37  ;;  %v4252_v36 = vld [vmem:[#allocation2 + $0x2c8] ss:$16 sps:$4 sm:$0xff]   ;;  %v4257_v37 = vld [vmem:[#allocation2 + $0xac] ss:$16 sps:$4 sm:$0xff]  }
  0x73   : > { %2046 = vmatprep.subr.bf16.mxu1 %v4188_v38  ;;  %v4260_v38 = vld [vmem:[#allocation2 + $0x2ac] ss:$16 sps:$4 sm:$0xff]  }
  0x75   : > { %2004 = vmatpush1.bf16.msra.mxu0 %v4183_v39  ;;  %v4255_v39 = vld [vmem:[#allocation2 + $0xa8] ss:$16 sps:$4 sm:$0xff]  }
  0x76   : > { %2047 = vmatpush1.bf16.msra.mxu1 %v4186_v40  ;;  %2005 = vmatprep.subr.bf16.mxu0 %v4191_v44  ;;  %v4258_v40 = vld [vmem:[#allocation2 + $0x2a8] ss:$16 sps:$4 sm:$0xff]  }
  0x77   : > { %2048 = vmatprep.subr.bf16.mxu1 %v4194_v45  ;;  %v4702_v44 = vld [vmem:[%s314_s20 + $0x8] sm:$0xff] }
  0x78   : > { %v4261_v45 = vld [vmem:[#allocation2 + $0x88] ss:$16 sps:$4 sm:$0xff]   ;;  %2259 = vperm.xlu0 %4045, %v4702_v44  }
  0x79   : > { %2006 = vmatpush1.bf16.msra.mxu0 %v4189_v49  ;;  %v4267_v49 = vld [vmem:[#allocation2 + $0x68] ss:$16 sps:$4 sm:$0xff]  }
  0x7a   : > { %2049 = vmatpush1.bf16.msra.mxu1 %v4192_v50  ;;  %2007 = vmatprep.subr.bf16.mxu0 %v4197_v51  ;;  %v4270_v50 = vld [vmem:[#allocation2 + $0x268] ss:$16 sps:$4 sm:$0xff]   ;;  %v4275_v51 = vld [vmem:[#allocation2 + $0x4c] ss:$16 sps:$4 sm:$0xff]  }
  0x7b   : > { %2050 = vmatprep.subr.bf16.mxu1 %v4200_v52  ;;  %v4278_v52 = vld [vmem:[#allocation2 + $0x24c] ss:$16 sps:$4 sm:$0xff]  }
  0x7d   : > { %2008 = vmatpush2.bf16.msra.mxu0 %v4195_v55  ;;  %v4273_v55 = vld [vmem:[#allocation2 + $0x48] ss:$16 sps:$4 sm:$0xff]  }
  0x7e   : > { %2051 = vmatpush2.bf16.msra.mxu1 %v4198_v56  ;;  %2009 = vmatprep.subr.bf16.mxu0 %v4203_v57  ;;  %v4276_v56 = vld [vmem:[#allocation2 + $0x248] ss:$16 sps:$4 sm:$0xff]   ;;  %v4281_v57 = vld [vmem:[#allocation2 + $0x2c] ss:$16 sps:$4 sm:$0xff]  }
  0x7f   : > { %2052 = vmatprep.subr.bf16.mxu1 %v4206_v58  ;;  %v4284_v58 = vld [vmem:[#allocation2 + $0x22c] ss:$16 sps:$4 sm:$0xff]  }
  0x81   : > { %2010 = vmatpush2.bf16.msra.mxu0 %v4201_v59  ;;  %v4279_v59 = vld [vmem:[#allocation2 + $0x28] ss:$16 sps:$4 sm:$0xff]  }
  0x82   : > { %2053 = vmatpush2.bf16.msra.mxu1 %v4204_v60  ;;  %2011 = vmatprep.subr.bf16.mxu0 %v4209_v61  ;;  %v4282_v60 = vld [vmem:[#allocation2 + $0x228] ss:$16 sps:$4 sm:$0xff]   ;;  %v4287_v61 = vld [vmem:[#allocation2 + $0xc] ss:$16 sps:$4 sm:$0xff]  }
  0x83   : > { %2054 = vmatprep.subr.bf16.mxu1 %v4212_v62  ;;  %v4290_v62 = vld [vmem:[#allocation2 + $0x20c] ss:$16 sps:$4 sm:$0xff]  }
  0x85   : > { %2012 = vmatpush2.bf16.msra.mxu0 %v4207_v63  ;;  %v4285_v63 = vld [vmem:[#allocation2 + $0x8] ss:$16 sps:$4 sm:$0xff]  }
  0x86   : > { %2055 = vmatpush2.bf16.msra.mxu1 %v4210_v0  ;;  %2013 = vmatprep.subr.bf16.mxu0 %v4215_v1  ;;  %v4288_v0 = vld [vmem:[#allocation2 + $0x208] ss:$16 sps:$4 sm:$0xff]   ;;  %v4293_v1 = vld [vmem:[#allocation2 + $0x1ec] ss:$16 sps:$4 sm:$0xff]  }
  0x87   : > { %2056 = vmatprep.subr.bf16.mxu1 %v4218_v2  ;;  %v4296_v2 = vld [vmem:[#allocation2 + $0x3ec] ss:$16 sps:$4 sm:$0xff]  }
  0x89   : > { %2014 = vmatpush2.bf16.msra.mxu0 %v4213_v3  ;;  %v4291_v3 = vld [vmem:[#allocation2 + $0x1e8] ss:$16 sps:$4 sm:$0xff]  }
  0x8a   : > { %2057 = vmatpush2.bf16.msra.mxu1 %v4216_v4  ;;  %2015 = vmatprep.subr.bf16.mxu0 %v4221_v5  ;;  %v4294_v4 = vld [vmem:[#allocation2 + $0x3e8] ss:$16 sps:$4 sm:$0xff]   ;;  %v4299_v5 = vld [vmem:[#allocation2 + $0x1cc] ss:$16 sps:$4 sm:$0xff]  }
  0x8b   : > { %2058 = vmatprep.subr.bf16.mxu1 %v4224_v6  ;;  %v4302_v6 = vld [vmem:[#allocation2 + $0x3cc] ss:$16 sps:$4 sm:$0xff]  }
  0x8d   : > { %2016 = vmatpush2.bf16.msra.mxu0 %v4219_v7  ;;  %v4297_v7 = vld [vmem:[#allocation2 + $0x1c8] ss:$16 sps:$4 sm:$0xff]  }
  0x8e   : > { %2059 = vmatpush2.bf16.msra.mxu1 %v4222_v8  ;;  %2017 = vmatprep.subr.bf16.mxu0 %v4227_v9  ;;  %v4300_v8 = vld [vmem:[#allocation2 + $0x3c8] ss:$16 sps:$4 sm:$0xff]   ;;  %v4305_v9 = vld [vmem:[#allocation2 + $0x1ac] ss:$16 sps:$4 sm:$0xff]  }
  0x8f   : > { %2060 = vmatprep.subr.bf16.mxu1 %v4230_v10  ;;  %v4308_v10 = vld [vmem:[#allocation2 + $0x3ac] ss:$16 sps:$4 sm:$0xff]  }
  0x91   : > { %2018 = vmatpush2.bf16.msra.mxu0 %v4225_v11  ;;  %v4303_v11 = vld [vmem:[#allocation2 + $0x1a8] ss:$16 sps:$4 sm:$0xff]  }
  0x92   : > { %2061 = vmatpush2.bf16.msra.mxu1 %v4228_v14  ;;  %2019 = vmatprep.subr.bf16.mxu0 %v4233_v15  ;;  %v4306_v14 = vld [vmem:[#allocation2 + $0x3a8] ss:$16 sps:$4 sm:$0xff]   ;;  %v4311_v15 = vld [vmem:[#allocation2 + $0x18c] ss:$16 sps:$4 sm:$0xff]  }
  0x93   : > { %2062 = vmatprep.subr.bf16.mxu1 %v4236_v16  ;;  %v4314_v16 = vld [vmem:[#allocation2 + $0x38c] ss:$16 sps:$4 sm:$0xff]  }
  0x95   : > { %2020 = vmatpush2.bf16.msra.mxu0 %v4231_v17  ;;  %v4309_v17 = vld [vmem:[#allocation2 + $0x188] ss:$16 sps:$4 sm:$0xff]  }
  0x96   : > { %2063 = vmatpush2.bf16.msra.mxu1 %v4234_v18  ;;  %2021 = vmatprep.subr.bf16.mxu0 %v4239_v19  ;;  %v4312_v18 = vld [vmem:[#allocation2 + $0x388] ss:$16 sps:$4 sm:$0xff]   ;;  %v4317_v19 = vld [vmem:[#allocation2 + $0x16c] ss:$16 sps:$4 sm:$0xff]  }
  0x97   : > { %2064 = vmatprep.subr.bf16.mxu1 %v4242_v20  ;;  %v4320_v20 = vld [vmem:[#allocation2 + $0x36c] ss:$16 sps:$4 sm:$0xff]  }
  0x99   : > { %2022 = vmatpush2.bf16.msra.mxu0 %v4237_v21  ;;  %v4315_v21 = vld [vmem:[#allocation2 + $0x168] ss:$16 sps:$4 sm:$0xff]  }
  0x9a   : > { %2065 = vmatpush2.bf16.msra.mxu1 %v4240_v22  ;;  %2077 = vmatprep.subr.bf16.mxu0 %v4245_v27  ;;  %v4318_v22 = vld [vmem:[#allocation2 + $0x368] ss:$16 sps:$4 sm:$0xff]   ;;  %v4329_v27 = vld [vmem:[#allocation2 + $0x12c] ss:$16 sps:$4 sm:$0xff]  }
  0x9b   : > { %2120 = vmatprep.subr.bf16.mxu1 %v4248_v28  ;;  %v4332_v28 = vld [vmem:[#allocation2 + $0x32c] ss:$16 sps:$4 sm:$0xff]  }
  0x9c   : > { %2024 = vmatmul.mubr.bf16.vlgmr.msra.gmra.mxu0 %v4685_v29 }
  0x9d   : > { %2067 = vmatmul.mubr.bf16.vlgmr.msra.gmra.mxu1 %v4687_v30  ;;  %2078 = vmatpush1.bf16.msra.mxu0 %v4243_v31  ;;  %v4327_v31 = vld [vmem:[#allocation2 + $0x128] ss:$16 sps:$4 sm:$0xff]  }
  0x9e   : > { %2121 = vmatpush1.bf16.msra.mxu1 %v4246_v32  ;;  %2079 = vmatprep.subr.bf16.mxu0 %v4251_v33  ;;  %v4330_v32 = vld [vmem:[#allocation2 + $0x328] ss:$16 sps:$4 sm:$0xff]   ;;  %v4335_v33 = vld [vmem:[#allocation2 + $0x10c] ss:$16 sps:$4 sm:$0xff]  }
  0x9f   : > { %2122 = vmatprep.subr.bf16.mxu1 %v4254_v34  ;;  %2109 = vmatprep.mubr.bf16.mxu0 %v4655_v53  ;;  %v4264_v53 = vld [vmem:[#allocation2 + $0x288] ss:$16 sps:$4 sm:$0xff]   ;;  %v4338_v34 = vld [vmem:[#allocation2 + $0x30c] ss:$16 sps:$4 sm:$0xff]  }
  0xa0   : > { %2152 = vmatprep.mubr.bf16.mxu1 %v4657_v54  ;;  %v4269_v54 = vld [vmem:[#allocation2 + $0x6c] ss:$16 sps:$4 sm:$0xff]  }
  0xa1   : > { %2080 = vmatpush1.bf16.msra.mxu0 %v4249_v35  ;;  %v4333_v35 = vld [vmem:[#allocation2 + $0x108] ss:$16 sps:$4 sm:$0xff]  }
  0xa2   : > { %2123 = vmatpush1.bf16.msra.mxu1 %v4252_v36  ;;  %2081 = vmatprep.subr.bf16.mxu0 %v4257_v37  ;;  %v4336_v36 = vld [vmem:[#allocation2 + $0x308] ss:$16 sps:$4 sm:$0xff]   ;;  %v4341_v37 = vld [vmem:[#allocation2 + $0x4ec] ss:$16 sps:$4 sm:$0xff]  }
  0xa3   : > { %2124 = vmatprep.subr.bf16.mxu1 %v4260_v38  ;;  %v4344_v38 = vld [vmem:[#allocation2 + $0x6ec] ss:$16 sps:$4 sm:$0xff]  }
  0xa5   : > { %2082 = vmatpush1.bf16.msra.mxu0 %v4255_v39  ;;  %v4339_v39 = vld [vmem:[#allocation2 + $0x4e8] ss:$16 sps:$4 sm:$0xff]  }
  0xa6   : > { %2125 = vmatpush1.bf16.msra.mxu1 %v4258_v40  ;;  %2083 = vmatprep.subr.bf16.mxu0 %v4263_v42  ;;  %v4342_v40 = vld [vmem:[#allocation2 + $0x6e8] ss:$16 sps:$4 sm:$0xff]   ;;  %v4347_v42 = vld [vmem:[#allocation2 + $0x4cc] ss:$16 sps:$4 sm:$0xff]  }
  0xa7   : > { %2126 = vmatprep.subr.bf16.mxu1 %v4266_v43  ;;  %v4350_v43 = vld [vmem:[#allocation2 + $0x6cc] ss:$16 sps:$4 sm:$0xff]  }
  0xa9   : > { %2084 = vmatpush1.bf16.msra.mxu0 %v4261_v45  ;;  %v4345_v45 = vld [vmem:[#allocation2 + $0x4c8] ss:$16 sps:$4 sm:$0xff]  }
  0xaa   : > { %2127 = vmatpush1.bf16.msra.mxu1 %v4264_v53  ;;  %2085 = vmatprep.subr.bf16.mxu0 %v4269_v54  ;;  %v4348_v53 = vld [vmem:[#allocation2 + $0x6c8] ss:$16 sps:$4 sm:$0xff]   ;;  %v4353_v54 = vld [vmem:[#allocation2 + $0x4ac] ss:$16 sps:$4 sm:$0xff]  }
  0xab   : > { %2128 = vmatprep.subr.bf16.mxu1 %v4272_v47  ;;  %v4356_v47 = vld [vmem:[#allocation2 + $0x6ac] ss:$16 sps:$4 sm:$0xff]  }
  0xad   : > { %2086 = vmatpush1.bf16.msra.mxu0 %v4267_v49  ;;  %v4351_v49 = vld [vmem:[#allocation2 + $0x4a8] ss:$16 sps:$4 sm:$0xff]  }
  0xae   : > { %2129 = vmatpush1.bf16.msra.mxu1 %v4270_v50  ;;  %2087 = vmatprep.subr.bf16.mxu0 %v4275_v51  ;;  %v4354_v50 = vld [vmem:[#allocation2 + $0x6a8] ss:$16 sps:$4 sm:$0xff]   ;;  %v4359_v51 = vld [vmem:[#allocation2 + $0x48c] ss:$16 sps:$4 sm:$0xff]  }
  0xaf   : > { %2130 = vmatprep.subr.bf16.mxu1 %v4278_v52  ;;  %v4565_v52 = vmov 1  }
  0xb0   : > { %4046 = vset.pattern.permute.xlu1 %v4565_v52  ;;  %v3782_v52 = vld [vmem:[%s5090_s5 + $0x1] ss:$8 sm:$0x3] }
  0xb1   : > { %2088 = vmatpush1.bf16.msra.mxu0 %v4273_v55  ;;  %v4360_v55 = vld [vmem:[#allocation2 + $0x688] ss:$16 sps:$4 sm:$0xff]   ;;  %2309 = vperm.xlu1 %4046, %v4699_v41  }
  0xb2   : > { %2131 = vmatpush1.bf16.msra.mxu1 %v4276_v56  ;;  %2089 = vmatprep.subr.bf16.mxu0 %v4281_v57  ;;  %v4365_v56 = vld [vmem:[#allocation2 + $0x46c] ss:$16 sps:$4 sm:$0xff]   ;;  %v4363_v57 = vld [vmem:[#allocation2 + $0x468] ss:$16 sps:$4 sm:$0xff]  }
  0xb3   : > { %2132 = vmatprep.subr.bf16.mxu1 %v4284_v58  ;;  %v4371_v58 = vld [vmem:[#allocation2 + $0x44c] ss:$16 sps:$4 sm:$0xff]  }
  0xb5   : > { %2090 = vmatpush1.bf16.msra.mxu0 %v4279_v59  ;;  %2313 = vperm.xlu1 %4046, %v4702_v44   ;;  %v4374_v59 = vld [vmem:[#allocation2 + $0x64c] ss:$16 sps:$4 sm:$0xff]  }
  0xb6   : > { %2133 = vmatpush1.bf16.msra.mxu1 %v4282_v60  ;;  %2091 = vmatprep.subr.bf16.mxu0 %v4287_v61  ;;  %v4369_v60 = vld [vmem:[#allocation2 + $0x448] ss:$16 sps:$4 sm:$0xff]  }
  0xb7   : > { %2134 = vmatprep.subr.bf16.mxu1 %v4290_v62  ;;  %v4372_v61 = vld [vmem:[#allocation2 + $0x648] ss:$16 sps:$4 sm:$0xff]   ;;  %v4566_v62 = vmov 2  }
  0xb8   : > { %4047 = vset.pattern.permute.xlu0 %v4566_v62 }
  0xb9   : > { %2092 = vmatpush1.bf16.msra.mxu0 %v4285_v63  ;;  %v4377_v63 = vld [vmem:[#allocation2 + $0x42c] ss:$16 sps:$4 sm:$0xff]   ;;  %4048 = vset.pattern.permute.xlu1 %v4566_v62  ;;  %v4447_v62 = vld [vmem:[%s5088_s3 + $0x160] sm:$0xff]  }
  0xba   : > { %2135 = vmatpush1.bf16.msra.mxu1 %v4288_v0  ;;  %2093 = vmatprep.subr.bf16.mxu0 %v4293_v1  ;;  %v4380_v0 = vld [vmem:[#allocation2 + $0x62c] ss:$16 sps:$4 sm:$0xff]   ;;  %v4375_v1 = vld [vmem:[#allocation2 + $0x428] ss:$16 sps:$4 sm:$0xff]  }
  0xbb   : > { %2136 = vmatprep.subr.bf16.mxu1 %v4296_v2  ;;  %2363 = vperm.xlu0 %4047, %v4699_v41   ;;  %v4378_v2 = vld [vmem:[#allocation2 + $0x628] ss:$16 sps:$4 sm:$0xff]  }
  0xbc   : > { %2367 = vperm.xlu1 %4048, %v4702_v44  }
  0xbd   : > { %2094 = vmatpush2.bf16.msra.mxu0 %v4291_v3  ;;  %v4383_v3 = vld [vmem:[#allocation2 + $0x40c] ss:$16 sps:$4 sm:$0xff]  }
  0xbe   : > { %2137 = vmatpush2.bf16.msra.mxu1 %v4294_v4  ;;  %2095 = vmatprep.subr.bf16.mxu0 %v4299_v5  ;;  %v4386_v4 = vld [vmem:[#allocation2 + $0x60c] ss:$16 sps:$4 sm:$0xff]   ;;  %v4567_v5 = vmov 3  }
  0xbf   : > { %2138 = vmatprep.subr.bf16.mxu1 %v4302_v6  ;;  %4050 = vset.pattern.permute.xlu0 %v4567_v5  ;;  %v4381_v6 = vld [vmem:[#allocation2 + $0x408] ss:$16 sps:$4 sm:$0xff]  }
  0xc0   : > { %4049 = vset.pattern.permute.xlu1 %v4567_v5  ;;  %2392 = vperm.xlu0 %4050, %v4702_v44   ;;  %v4404_v44 = vld [vmem:[#allocation2 + $0x7ac] ss:$16 sps:$4 sm:$0xff]  }
  0xc1   : > { %2096 = vmatpush2.bf16.msra.mxu0 %v4297_v7  ;;  %v4384_v7 = vld [vmem:[#allocation2 + $0x608] ss:$16 sps:$4 sm:$0xff]   ;;  %2388 = vperm.xlu1 %4049, %v4699_v41  }
  0xc2   : > { %2139 = vmatpush2.bf16.msra.mxu1 %v4300_v8  ;;  %2097 = vmatprep.subr.bf16.mxu0 %v4305_v9  ;;  %v4389_v8 = vld [vmem:[#allocation2 + $0x5ec] ss:$16 sps:$4 sm:$0xff]   ;;  %v4399_v41 = vld [vmem:[#allocation2 + $0x5a8] ss:$16 sps:$4 sm:$0xff]  }
  0xc3   : > { %2140 = vmatprep.subr.bf16.mxu1 %v4308_v10  ;;  %v4392_v9 = vld [vmem:[#allocation2 + $0x7ec] ss:$16 sps:$4 sm:$0xff]   ;;  %v4387_v10 = vld [vmem:[#allocation2 + $0x5e8] ss:$16 sps:$4 sm:$0xff]  }
  0xc5   : > { %2098 = vmatpush2.bf16.msra.mxu0 %v4303_v11  ;;  %v4390_v11 = vld [vmem:[#allocation2 + $0x7e8] ss:$16 sps:$4 sm:$0xff]  }
  0xc6   : > { %2141 = vmatpush2.bf16.msra.mxu1 %v4306_v14  ;;  %2099 = vmatprep.subr.bf16.mxu0 %v4311_v15  ;;  %v4395_v14 = vld [vmem:[#allocation2 + $0x5cc] ss:$16 sps:$4 sm:$0xff]  }
  0xc7   : > { %2142 = vmatprep.subr.bf16.mxu1 %v4314_v16  ;;  %v4398_v15 = vld [vmem:[#allocation2 + $0x7cc] ss:$16 sps:$4 sm:$0xff]   ;;  %v4393_v16 = vld [vmem:[#allocation2 + $0x5c8] ss:$16 sps:$4 sm:$0xff]  }
  0xc9   : > { %2100 = vmatpush2.bf16.msra.mxu0 %v4309_v17  ;;  %v4396_v17 = vld [vmem:[#allocation2 + $0x7c8] ss:$16 sps:$4 sm:$0xff]  }
  0xca   : > { %2143 = vmatpush2.bf16.msra.mxu1 %v4312_v18  ;;  %2101 = vmatprep.subr.bf16.mxu0 %v4317_v19  ;;  %v4401_v18 = vld [vmem:[#allocation2 + $0x5ac] ss:$16 sps:$4 sm:$0xff]   ;;  %v4402_v19 = vld [vmem:[#allocation2 + $0x7a8] ss:$16 sps:$4 sm:$0xff]  }
  0xcb   : > { %2144 = vmatprep.subr.bf16.mxu1 %v4320_v20  ;;  %v4407_v20 = vld [vmem:[#allocation2 + $0x58c] ss:$16 sps:$4 sm:$0xff]  }
  0xcd   : > { %2102 = vmatpush2.bf16.msra.mxu0 %v4315_v21  ;;  %v4410_v21 = vld [vmem:[#allocation2 + $0x78c] ss:$16 sps:$4 sm:$0xff]  }
  0xce   : > { %2145 = vmatpush2.bf16.msra.mxu1 %v4318_v22  ;;  %2103 = vmatprep.subr.bf16.mxu0 %v4323_v23  ;;  %v4405_v22 = vld [vmem:[#allocation2 + $0x588] ss:$16 sps:$4 sm:$0xff]  }
  0xcf   : > { %2146 = vmatprep.subr.bf16.mxu1 %v4326_v24  ;;  %v4408_v23 = vld [vmem:[#allocation2 + $0x788] ss:$16 sps:$4 sm:$0xff]   ;;  %v4413_v24 = vld [vmem:[#allocation2 + $0x56c] ss:$16 sps:$4 sm:$0xff]  }
  0xd1   : > { %2104 = vmatpush2.bf16.msra.mxu0 %v4321_v25  ;;  %v4416_v25 = vld [vmem:[#allocation2 + $0x76c] ss:$16 sps:$4 sm:$0xff]  }
  0xd2   : > { %2147 = vmatpush2.bf16.msra.mxu1 %v4324_v26  ;;  %2105 = vmatprep.subr.bf16.mxu0 %v4329_v27  ;;  %v4411_v26 = vld [vmem:[#allocation2 + $0x568] ss:$16 sps:$4 sm:$0xff]  }
  0xd3   : > { %2148 = vmatprep.subr.bf16.mxu1 %v4332_v28  ;;  %v4414_v27 = vld [vmem:[#allocation2 + $0x768] ss:$16 sps:$4 sm:$0xff]   ;;  %v4419_v28 = vld [vmem:[#allocation2 + $0x54c] ss:$16 sps:$4 sm:$0xff]  }
  0xd5   : > { %2106 = vmatpush2.bf16.msra.mxu0 %v4327_v31  ;;  %v4422_v31 = vld [vmem:[#allocation2 + $0x74c] ss:$16 sps:$4 sm:$0xff]  }
  0xd6   : > { %2149 = vmatpush2.bf16.msra.mxu1 %v4330_v32  ;;  %2107 = vmatprep.subr.bf16.mxu0 %v4335_v33  ;;  %v4417_v32 = vld [vmem:[#allocation2 + $0x548] ss:$16 sps:$4 sm:$0xff]  }
  0xd7   : > { %2150 = vmatprep.subr.bf16.mxu1 %v4338_v34  ;;  %v4420_v33 = vld [vmem:[#allocation2 + $0x748] ss:$16 sps:$4 sm:$0xff]   ;;  %v4425_v34 = vld [vmem:[#allocation2 + $0x52c] ss:$16 sps:$4 sm:$0xff]  }
  0xd9   : > { %2108 = vmatpush2.bf16.msra.mxu0 %v4333_v35  ;;  %v4428_v35 = vld [vmem:[#allocation2 + $0x72c] ss:$16 sps:$4 sm:$0xff]  }
  0xda   : > { %2151 = vmatpush2.bf16.msra.mxu1 %v4336_v36  ;;  %2163 = vmatprep.subr.bf16.mxu0 %v4341_v37  ;;  %v4423_v36 = vld [vmem:[#allocation2 + $0x528] ss:$16 sps:$4 sm:$0xff]  }
  0xdb   : > { %2206 = vmatprep.subr.bf16.mxu1 %v4344_v38  ;;  %v4426_v37 = vld [vmem:[#allocation2 + $0x728] ss:$16 sps:$4 sm:$0xff]   ;;  %v4431_v38 = vld [vmem:[#allocation2 + $0x50c] ss:$16 sps:$4 sm:$0xff]  }
  0xdc   : > { %2110 = vmatmul.mubr.bf16.vlgmr.msra.gmra.mxu0 %v4665_v12  ;;  %v4362_v12 = vld [vmem:[#allocation2 + $0x68c] ss:$16 sps:$4 sm:$0xff]  }
  0xdd   : > { %2153 = vmatmul.mubr.bf16.vlgmr.msra.gmra.mxu1 %v4667_v13  ;;  %2164 = vmatpush1.bf16.msra.mxu0 %v4339_v39  ;;  %v4357_v13 = vld [vmem:[#allocation2 + $0x488] ss:$16 sps:$4 sm:$0xff]   ;;  %v4434_v39 = vld [vmem:[#allocation2 + $0x70c] ss:$16 sps:$4 sm:$0xff]  }
  0xde   : > { %2207 = vmatpush1.bf16.msra.mxu1 %v4342_v40  ;;  %2165 = vmatprep.subr.bf16.mxu0 %v4347_v42  ;;  %v605_v40 = vlaneseq  ;;  %v4429_v42 = vld [vmem:[#allocation2 + $0x508] ss:$16 sps:$4 sm:$0xff]  }
  0xdf   : > { %2208 = vmatprep.subr.bf16.mxu1 %v4350_v43  ;;  %2195 = vmatprep.mubr.bf16.mxu0 %v4674_v46  ;;  %v4368_v46 = vld [vmem:[#allocation2 + $0x66c] ss:$16 sps:$4 sm:$0xff]   ;;  %v4432_v43 = vld [vmem:[#allocation2 + $0x708] ss:$16 sps:$4 sm:$0xff]  }
  0xe0   : > { %2238 = vmatprep.mubr.bf16.mxu1 %v4677_v48  ;;  %v4366_v48 = vld [vmem:[#allocation2 + $0x668] ss:$16 sps:$4 sm:$0xff]  }
  0xe1   : > { %2166 = vmatpush1.bf16.msra.mxu0 %v4345_v45  ;;  %v4715_v45 = vshrl.u32 %v605_v40, 7  ;;  %v4469_v40 = vld [vmem:[%s5088_s3 + $0x1f8] sm:$0xff]  }
  0xe2   : > { %2209 = vmatpush1.bf16.msra.mxu1 %v4348_v53  ;;  %2167 = vmatprep.subr.bf16.mxu0 %v4353_v54  ;;  %v4435_v53 = vld [vmem:[%s5088_s3 + $0x178] sm:$0xff]  }
  0xe3   : > { %2210 = vmatprep.subr.bf16.mxu1 %v4356_v47  ;;  %v4436_v54 = vld [vmem:[%s5088_s3 + $0x78] sm:$0xff]  }
  0xe4   : > { %v4437_v47 = vld [vmem:[%s5088_s3 + $0x138] sm:$0xff]  }
  0xe5   : > { %2168 = vmatpush1.bf16.msra.mxu0 %v4351_v49  ;;  %v4438_v49 = vld [vmem:[%s5088_s3 + $0x38] sm:$0xff]  }
  0xe6   : > { %2211 = vmatpush1.bf16.msra.mxu1 %v4354_v50  ;;  %2169 = vmatprep.subr.bf16.mxu0 %v4359_v51  ;;  %v2251_v50 = vld [vmem:[%s5090_s5] ss:$8 sm:$0x3]  ;;  %v4733_v51 = vsub.s32 1, %v4715_v45 }
  0xe7   : > { %2212 = vmatprep.subr.bf16.mxu1 %v4362_v12  ;;  %v4439_v12 = vld [vmem:[%s5088_s3 + $0x170] sm:$0xff]  }
  0xe9   : > { %2170 = vmatpush1.bf16.msra.mxu0 %v4357_v13  ;;  %v4440_v13 = vld [vmem:[%s5088_s3 + $0x70] sm:$0xff]  }
  0xea   : > { %2213 = vmatpush1.bf16.msra.mxu1 %v4360_v55  ;;  %2171 = vmatprep.subr.bf16.mxu0 %v4365_v56  ;;  %v2270_v55 = vrot.slane %v2251_v50, %v4733_v51  ;;  %v4441_v56 = vld [vmem:[%s5088_s3 + $0x130] sm:$0xff]  }
  0xeb   : > { %2214 = vmatprep.subr.bf16.mxu1 %v4368_v46  ;;  %v4442_v46 = vld [vmem:[%s5088_s3 + $0x30] sm:$0xff]  }
  0xed   : > { %2172 = vmatpush1.bf16.msra.mxu0 %v4363_v57  ;;  %v2287_v57 = vrot.slane %v3782_v52, %v4733_v51 }
  0xee   : > { %2215 = vmatpush1.bf16.msra.mxu1 %v4366_v48  ;;  %2173 = vmatprep.subr.bf16.mxu0 %v4371_v58  ;;  %v2255_v48 = vpop.permute.xlu0 %2254 }
  0xef   : > { %2216 = vmatprep.subr.bf16.mxu1 %v4374_v59  ;;  %v2274_v58 = vmul.f32 %v2270_v55, %v2255_v48  ;;  %v4445_v59 = vld [vmem:[%s5088_s3 + $0x128] sm:$0xff]  }
  0xf1   : > { %2174 = vmatpush1.bf16.msra.mxu0 %v4369_v60  ;;  %v4446_v60 = vld [vmem:[%s5088_s3 + $0x28] sm:$0xff]  }
  0xf2   : > { %2217 = vmatpush1.bf16.msra.mxu1 %v4372_v61  ;;  %2175 = vmatprep.subr.bf16.mxu0 %v4377_v63  ;;  %v4767_v61 = vsub.s32 0, %v4715_v45  ;;  %v4448_v63 = vld [vmem:[%s5088_s3 + $0x60] sm:$0xff]  }
  0xf3   : > { %2218 = vmatprep.subr.bf16.mxu1 %v4380_v0  ;;  %v2291_v0 = vadd.f32 %v2287_v57, %v2274_v58 }
  0xf5   : > { %2176 = vmatpush1.bf16.msra.mxu0 %v4375_v1  ;;  %v2260_v1 = vpop.permute.xlu0 %2259  ;;  %v2299_v5 = vmul.f32 0.01, %v2291_v0  ;;  %vm2295_vm0 = vcmp.gt.f32.partialorder %v2291_v0, 0.0 }
  0xf6   : > { %2219 = vmatpush1.bf16.msra.mxu1 %v4378_v2  ;;  %2177 = vmatprep.subr.bf16.mxu0 %v4383_v3  ;;  %v2266_v2 = vrot.slane %v2251_v50, %v4767_v61  ;;  %v4449_v3 = vld [vmem:[%s5088_s3 + $0x120] sm:$0xff]  }
  0xf7   : > { %2220 = vmatprep.subr.bf16.mxu1 %v4386_v4  ;;  %v4450_v4 = vld [vmem:[%s5088_s3 + $0x20] sm:$0xff]  }
  0xf8   : > { %v4478_v50 = vld [vmem:[%s5088_s3 + $0xe0] sm:$0xff]  }
  0xf9   : > { %2178 = vmatpush1.bf16.msra.mxu0 %v4381_v6  ;;  %v2276_v6 = vmul.f32 %v2270_v55, %v2260_v1 }
  0xfa   : > { %2221 = vmatpush1.bf16.msra.mxu1 %v4384_v7  ;;  %2179 = vmatprep.subr.bf16.mxu0 %v4389_v8  ;;  %v4451_v7 = vld [vmem:[%s5088_s3 + $0x158] sm:$0xff]  }
  0xfb   : > { %2222 = vmatprep.subr.bf16.mxu1 %v4392_v9  ;;  %v4452_v8 = vld [vmem:[%s5088_s3 + $0x58] sm:$0xff]   ;;  %v2293_v9 = vadd.f32 %v2287_v57, %v2276_v6 }
  0xfd   : > { %2180 = vmatpush2.bf16.msra.mxu0 %v4387_v10  ;;  %v2283_v10 = vrot.slane %v3782_v52, %v4767_v61  ;;  %vm2297_vm1 = vcmp.gt.f32.partialorder %v2293_v9, 0.0  ;;  %v4484_v52 = vld [vmem:[%s5088_s3 + $0x98] sm:$0xff]  }
  0xfe   : > { %2223 = vmatpush2.bf16.msra.mxu1 %v4390_v11  ;;  %2181 = vmatprep.subr.bf16.mxu0 %v4395_v14  ;;  %v2273_v11 = vmul.f32 %v2266_v2, %v2255_v48  ;;  %v4453_v14 = vld [vmem:[%s5088_s3 + $0x118] sm:$0xff]  }
  0xff   : > { %2224 = vmatprep.subr.bf16.mxu1 %v4398_v15  ;;  %v4454_v15 = vld [vmem:[%s5088_s3 + $0x18] sm:$0xff]  }
 0x101   : > { %2182 = vmatpush2.bf16.msra.mxu0 %v4393_v16  ;;  %v2275_v16 = vmul.f32 %v2266_v2, %v2260_v1  ;;  %v4486_v1 = vld [vmem:[%s5088_s3 + $0xd0] sm:$0xff]  }
 0x102   : > { %2225 = vmatpush2.bf16.msra.mxu1 %v4396_v17  ;;  %2183 = vmatprep.subr.bf16.mxu0 %v4401_v18  ;;  %v2301_v17 = vmul.f32 0.01, %v2293_v9  ;;  %v2303_v18 = vsel %vm2295_vm0, %v2291_v0, %v2299_v5  ;;  %v4488_v5 = vld [vmem:[%s5088_s3 + $0x90] sm:$0xff]  }
 0x103   : > { %2226 = vmatprep.subr.bf16.mxu1 %v4404_v44  ;;  %v4455_v44 = vld [vmem:[%s5088_s3 + $0x150] sm:$0xff]  }
 0x105   : > { %2184 = vmatpush2.bf16.msra.mxu0 %v4399_v41  ;;  %v4456_v41 = vld [vmem:[%s5088_s3 + $0x50] sm:$0xff]  }
 0x106   : > { %2227 = vmatpush2.bf16.msra.mxu1 %v4402_v19  ;;  %2185 = vmatprep.subr.bf16.mxu0 %v4407_v20  ;;  %v2305_v19 = vsel %vm2297_vm1, %v2293_v9, %v2301_v17 }
 0x107   : > { %2228 = vmatprep.subr.bf16.mxu1 %v4410_v21  ;;  %v2513_v20 = vpack.c.bf16 %v2305_v19, %v2303_v18  ;;  %v2290_v21 = vadd.f32 %v2283_v10, %v2273_v11  ;;  %v3783_v11 = vld [vmem:[%s5090_s5 + $0x2] ss:$8 sm:$0x3] }
 0x108   : > { %v4490_v19 = vld [vmem:[%s5088_s3 + $0xc8] sm:$0xff]  }
 0x109   : > { %2186 = vmatpush2.bf16.msra.mxu0 %v4405_v22  ;;  %v2292_v22 = vadd.f32 %v2283_v10, %v2275_v16  ;;  %vm2294_vm2 = vcmp.gt.f32.partialorder %v2290_v21, 0.0 }
 0x10a   : > { %2229 = vmatpush2.bf16.msra.mxu1 %v4408_v23  ;;  %2187 = vmatprep.subr.bf16.mxu0 %v4413_v24  ;;  %v4457_v23 = vld [vmem:[%s5088_s3 + $0x110] sm:$0xff]  }
 0x10b   : > { %2230 = vmatprep.subr.bf16.mxu1 %v4416_v25  ;;  %v4458_v24 = vld [vmem:[%s5088_s3 + $0x10] sm:$0xff]   ;;  %v4459_v25 = vld [vmem:[%s5088_s3 + $0x148] sm:$0xff]   ;;  %vm2296_vm3 = vcmp.gt.f32.partialorder %v2292_v22, 0.0 }
 0x10d   : > { %2188 = vmatpush2.bf16.msra.mxu0 %v4411_v26  ;;  %v4460_v26 = vld [vmem:[%s5088_s3 + $0x48] sm:$0xff]  }
 0x10e   : > { %2231 = vmatpush2.bf16.msra.mxu1 %v4414_v27  ;;  %2189 = vmatprep.subr.bf16.mxu0 %v4419_v28  ;;  %v2298_v27 = vmul.f32 0.01, %v2290_v21  ;;  %v2300_v28 = vmul.f32 0.01, %v2292_v22 }
 0x10f   : > { %2232 = vmatprep.subr.bf16.mxu1 %v4422_v31  ;;  %v4461_v31 = vld [vmem:[%s5088_s3 + $0x108] sm:$0xff]  }
 0x111   : > { %2190 = vmatpush2.bf16.msra.mxu0 %v4417_v32  ;;  %v4462_v32 = vld [vmem:[%s5088_s3 + $0x8] sm:$0xff]  }
 0x112   : > { %2233 = vmatpush2.bf16.msra.mxu1 %v4420_v33  ;;  %2191 = vmatprep.subr.bf16.mxu0 %v4425_v34  ;;  %v4463_v33 = vld [vmem:[%s5088_s3 + $0x140] sm:$0xff]  }
 0x113   : > { %2234 = vmatprep.subr.bf16.mxu1 %v4428_v35  ;;  %v4464_v34 = vld [vmem:[%s5088_s3 + $0x40] sm:$0xff]   ;;  %v2302_v35 = vsel %vm2294_vm2, %v2290_v21, %v2298_v27 }
 0x115   : > { %2192 = vmatpush2.bf16.msra.mxu0 %v4423_v36  ;;  %v2304_v36 = vsel %vm2296_vm3, %v2292_v22, %v2300_v28 }
 0x116   : > { %2235 = vmatpush2.bf16.msra.mxu1 %v4426_v37  ;;  %2193 = vmatprep.subr.bf16.mxu0 %v4431_v38  ;;  %v4465_v37 = vld [vmem:[%s5088_s3 + $0x100] sm:$0xff]  }
 0x117   : > { %2236 = vmatprep.subr.bf16.mxu1 %v4434_v39  ;;  %v4466_v38 = vld [vmem:[%s5088_s3] sm:$0xff]   ;;  %v4467_v39 = vld [vmem:[%s5088_s3 + $0xf8] sm:$0xff]  }
 0x119   : > { %2194 = vmatpush2.bf16.msra.mxu0 %v4429_v42  ;;  %v2512_v42 = vpack.c.bf16 %v2304_v36, %v2302_v35  ;;  %v4496_v36 = vld [vmem:[%s5088_s3 + $0x80] sm:$0xff]  }
 0x11a   : > { %2237 = vmatpush2.bf16.msra.mxu1 %v4432_v43  ;;  %3879 = vmatprep.subr.bf16.mxu0 %v4435_v53  ;;  %v4468_v43 = vld [vmem:[%s5088_s3 + $0xb8] sm:$0xff]   ;;  %v4470_v53 = vld [vmem:[%s5088_s3 + $0xf0] sm:$0xff]  }
 0x11b   : > { %3901 = vmatprep.subr.bf16.mxu1 %v4436_v54  ;;  %v4472_v54 = vld [vmem:[%s5088_s3 + $0xb0] sm:$0xff]  }
 0x11c   : > { %2196 = vmatmul.mubr.bf16.vlgmr.msra.gmra.mxu0 %v4685_v29  ;;  %v4443_v29 = vld [vmem:[%s5088_s3 + $0x168] sm:$0xff]   ;;  %v1939_v55 = vpop.f32.mrf.mxu0 }
 0x11d   : > { %2239 = vmatmul.mubr.bf16.vlgmr.msra.gmra.mxu1 %v4687_v30  ;;  %3880 = vmatpush3.bf16.msra.mxu0 %v4437_v47  ;;  %v4444_v30 = vld [vmem:[%s5088_s3 + $0x68] sm:$0xff]  }
 0x11e   : > { %3902 = vmatpush3.bf16.msra.mxu1 %v4438_v49  ;;  %3881 = vmatprep.subr.bf16.mxu0 %v4439_v12  ;;  %v4474_v47 = vld [vmem:[%s5088_s3 + $0xe8] sm:$0xff]   ;;  %v4480_v12 = vld [vmem:[%s5088_s3 + $0xa0] sm:$0xff]  }
 0x11f   : > { %3903 = vmatprep.subr.bf16.mxu1 %v4440_v13  ;;  %2674 = vmatprep.mubr.bf16.mxu0 %v2513_v20  ;;  %v4476_v49 = vld [vmem:[%s5088_s3 + $0xa8] sm:$0xff]   ;;  %v4482_v13 = vld [vmem:[%s5088_s3 + $0xd8] sm:$0xff]  }
 0x120   : > { %v4492_v20 = vld [vmem:[%s5088_s3 + $0x88] sm:$0xff]  }
 0x121   : > { %3882 = vmatpush3.bf16.msra.mxu0 %v4441_v56  ;;  %v1982_v56 = vpop.f32.mrf.mxu1 }
 0x122   : > { %3904 = vmatpush3.bf16.msra.mxu1 %v4442_v46  ;;  %3883 = vmatprep.subr.bf16.mxu0 %v4443_v29  ;;  %v1941_v46 = vpop.f32.mrf.mxu0 }
 0x123   : > { %3905 = vmatprep.subr.bf16.mxu1 %v4444_v30  ;;  %v1984_v29 = vpop.f32.mrf.mxu1  ;;  %v4867_v30 = vld [vmem:[%s5091_s6] ss:$8 sm:$0xf] }
 0x124   : > { %v1943_v57 = vpop.f32.mrf.mxu0  ;;  %v612_v58 = vrot.slane %v4867_v30, %v4733_v51 }
 0x125   : > { %3884 = vmatpush3.bf16.msra.mxu0 %v4445_v59  ;;  %v1986_v48 = vpop.f32.mrf.mxu1  ;;  %v608_v59 = vrot.slane %v4867_v30, %v4767_v61 }
 0x126   : > { %3906 = vmatpush3.bf16.msra.mxu1 %v4446_v60  ;;  %3885 = vmatprep.subr.bf16.mxu0 %v4447_v62  ;;  %v1945_v60 = vpop.f32.mrf.mxu0 }
 0x127   : > { %3907 = vmatprep.subr.bf16.mxu1 %v4448_v63  ;;  %v1988_v62 = vpop.f32.mrf.mxu1  ;;  %v1942_v63 = vadd.f32 %v1941_v46, %v612_v58  ;;  %v1944_v0 = vadd.f32 %v1943_v57, %v608_v59  ;;  %v1940_v2 = vadd.f32 %v1939_v55, %v608_v59  ;;  %v1946_v6 = vadd.f32 %v1945_v60, %v612_v58  ;;  %v4477_v55 = vld [vmem:[%s5088_s3 + $0x1e8] sm:$0xff]   ;;  %v4483_v57 = vld [vmem:[%s5088_s3 + $0x1a0] sm:$0xff]   ;;  %v4485_v58 = vld [vmem:[%s5088_s3 + $0x1d8] sm:$0xff]  }
 0x128   : > { %v4479_v46 = vld [vmem:[%s5088_s3 + $0x1a8] sm:$0xff]  }
 0x129   : > { %3886 = vmatpush3.bf16.msra.mxu0 %v4449_v3  ;;  %v1985_v9 = vadd.f32 %v1984_v29, %v1942_v63  ;;  %v1987_v10 = vadd.f32 %v1986_v48, %v1944_v0  ;;  %v1983_v16 = vadd.f32 %v1982_v56, %v1940_v2  ;;  %v1989_v21 = vadd.f32 %v1988_v62, %v1946_v6  ;;  %v4481_v29 = vld [vmem:[%s5088_s3 + $0x1e0] sm:$0xff]   ;;  %v4487_v62 = vld [vmem:[%s5088_s3 + $0x198] sm:$0xff]   ;;  %v4489_v0 = vld [vmem:[%s5088_s3 + $0x1d0] sm:$0xff]  }
 0x12a   : > { %3908 = vmatpush3.bf16.msra.mxu1 %v4450_v4  ;;  %3887 = vmatprep.subr.bf16.mxu0 %v4451_v7  ;;  %v2320_v48 = vrot.slane %v3783_v11, %v4767_v61 }
 0x12b   : > { %3909 = vmatprep.subr.bf16.mxu1 %v4452_v8 }
 0x12d   : > { %3888 = vmatpush3.bf16.msra.mxu0 %v4453_v14  ;;  %v3784_v14 = vld [vmem:[%s5090_s5 + $0x3] ss:$8 sm:$0x3] }
 0x12e   : > { %3910 = vmatpush3.bf16.msra.mxu1 %v4454_v15  ;;  %3889 = vmatprep.subr.bf16.mxu0 %v4455_v44  ;;  %v2310_v15 = vpop.permute.xlu1 %2309  ;;  %v2324_v44 = vrot.slane %v3783_v11, %v4733_v51  ;;  %v2337_v59 = vrot.slane %v3784_v14, %v4767_v61  ;;  %v4498_v11 = vld [vmem:[%s5088_s3 + $0x180] sm:$0xff]  }
 0x12f   : > { %3911 = vmatprep.subr.bf16.mxu1 %v4456_v41  ;;  %v2341_v41 = vrot.slane %v3784_v14, %v4733_v51  ;;  %v2327_v60 = vmul.f32 %v2320_v48, %v2310_v15 }
 0x131   : > { %3890 = vmatpush3.bf16.msra.mxu0 %v4457_v23 }
 0x132   : > { %3912 = vmatpush3.bf16.msra.mxu1 %v4458_v24  ;;  %3891 = vmatprep.subr.bf16.mxu0 %v4459_v25  ;;  %v2314_v28 = vpop.permute.xlu1 %2313 }
 0x133   : > { %3913 = vmatprep.subr.bf16.mxu1 %v4460_v26  ;;  %v2328_v26 = vmul.f32 %v2324_v44, %v2310_v15  ;;  %v2330_v35 = vmul.f32 %v2324_v44, %v2314_v28  ;;  %v2329_v63 = vmul.f32 %v2320_v48, %v2314_v28 }
 0x135   : > { %3892 = vmatpush3.bf16.msra.mxu0 %v4461_v31  ;;  %v4494_v31 = vld [vmem:[%s5088_s3 + $0xc0] sm:$0xff]   ;;  %v2346_v2 = vadd.f32 %v2337_v59, %v2329_v63 }
 0x136   : > { %3914 = vmatpush3.bf16.msra.mxu1 %v4462_v32  ;;  %3893 = vmatprep.subr.bf16.mxu0 %v4463_v33 }
 0x137   : > { %3915 = vmatprep.subr.bf16.mxu1 %v4464_v34  ;;  %v2345_v34 = vadd.f32 %v2341_v41, %v2328_v26  ;;  %v2354_v6 = vmul.f32 0.01, %v2346_v2  ;;  %vm2350_vm7 = vcmp.gt.f32.partialorder %v2346_v2, 0.0  ;;  %v4949_v15 = vpop.permute.xlu1 %2367  ;;  %v619_v26 = vsub.s32 3, %v4715_v45 }
 0x139   : > { %3894 = vmatpush3.bf16.msra.mxu0 %v4465_v37  ;;  %vm2349_vm4 = vcmp.gt.f32.partialorder %v2345_v34, 0.0 }
 0x13a   : > { %3916 = vmatpush3.bf16.msra.mxu1 %v4466_v38  ;;  %3923 = vmatprep.subr.bf16.mxu0 %v4467_v39 }
 0x13b   : > { %3945 = vmatprep.subr.bf16.mxu1 %v4469_v40  ;;  %v2353_v40 = vmul.f32 0.01, %v2345_v34 }
 0x13c   : > { %2675 = vmatmul.mubr.bf16.vlgmr.msra.gmra.mxu0 %v2512_v42 }
 0x13d   : > { %3924 = vmatpush3.bf16.msra.mxu0 %v4468_v43  ;;  %v4471_v43 = vld [vmem:[%s5088_s3 + $0x1b8] sm:$0xff]  }
 0x13e   : > { %3925 = vmatprep.subr.bf16.mxu0 %v4470_v53  ;;  %v2347_v53 = vadd.f32 %v2341_v41, %v2330_v35 }
 0x140   : > { %vm2351_vm5 = vcmp.gt.f32.partialorder %v2347_v53, 0.0 }
 0x141   : > { %3926 = vmatpush3.bf16.msra.mxu0 %v4472_v54  ;;  %v4499_v54 = vld [vmem:[%s5088_s3 + $0x278] sm:$0xff]  }
 0x142   : > { %3927 = vmatprep.subr.bf16.mxu0 %v4474_v47 }
 0x145   : > { %3928 = vmatpush3.bf16.msra.mxu0 %v4476_v49  ;;  %v4473_v49 = vld [vmem:[%s5088_s3 + $0x1f0] sm:$0xff]  }
 0x146   : > { %3929 = vmatprep.subr.bf16.mxu0 %v4478_v50  ;;  %v2355_v50 = vmul.f32 0.01, %v2347_v53 }
 0x149   : > { %3930 = vmatpush3.bf16.msra.mxu0 %v4480_v12  ;;  %v2357_v12 = vsel %vm2349_vm4, %v2345_v34, %v2353_v40 }
 0x14a   : > { %3931 = vmatprep.subr.bf16.mxu0 %v4482_v13  ;;  %v4475_v13 = vld [vmem:[%s5088_s3 + $0x1b0] sm:$0xff]  }
 0x14d   : > { %3932 = vmatpush3.bf16.msra.mxu0 %v4484_v52  ;;  %v2359_v52 = vsel %vm2351_vm5, %v2347_v53, %v2355_v50 }
 0x14e   : > { %3933 = vmatprep.subr.bf16.mxu0 %v4486_v1  ;;  %v2958_v56 = vpack.c.bf16 %v2359_v52, %v2357_v12  ;;  %v2344_v1 = vadd.f32 %v2337_v59, %v2327_v60 }
 0x150   : > { %vm2348_vm6 = vcmp.gt.f32.partialorder %v2344_v1, 0.0 }
 0x151   : > { %3934 = vmatpush3.bf16.msra.mxu0 %v4488_v5  ;;  %v2352_v5 = vmul.f32 0.01, %v2344_v1 }
 0x152   : > { %3935 = vmatprep.subr.bf16.mxu0 %v4490_v19 }
 0x155   : > { %3936 = vmatpush3.bf16.msra.mxu0 %v4492_v20 }
 0x156   : > { %3937 = vmatprep.subr.bf16.mxu0 %v4494_v31 }
 0x159   : > { %3938 = vmatpush3.bf16.msra.mxu0 %v4496_v36  ;;  %v620_v36 = vrot.slane %v4867_v30, %v619_v26  ;;  %v4507_v26 = vld [vmem:[%s5088_s3 + $0x258] sm:$0xff]  }
 0x15a   : > { %3967 = vmatprep.subr.bf16.mxu0 %v4499_v54 }
 0x15c   : > { %v2025_v3 = vpop.f32.mrf.mxu0 }
 0x15d   : > { %v2068_v4 = vpop.f32.mrf.mxu1  ;;  %v2026_v24 = vadd.f32 %v2025_v3, %v1983_v16  ;;  %v4491_v3 = vld [vmem:[%s5088_s3 + $0x190] sm:$0xff]   ;;  %v4951_v16 = vpop.permute.xlu0 %2363 }
 0x15e   : > { %v2027_v7 = vpop.f32.mrf.mxu0 }
 0x15f   : > { %v2070_v8 = vpop.f32.mrf.mxu1  ;;  %v2028_v22 = vadd.f32 %v2027_v7, %v1985_v9  ;;  %v2069_v39 = vadd.f32 %v2068_v4, %v2026_v24  ;;  %v4493_v4 = vld [vmem:[%s5088_s3 + $0x1c8] sm:$0xff]   ;;  %v2356_v9 = vsel %vm2348_vm6, %v2344_v1, %v2352_v5 }
 0x160   : > { %v2029_v17 = vpop.f32.mrf.mxu0  ;;  %v4495_v7 = vld [vmem:[%s5088_s3 + $0x188] sm:$0xff]  }
 0x161   : > { %v2072_v18 = vpop.f32.mrf.mxu1  ;;  %v2030_v23 = vadd.f32 %v2029_v17, %v1987_v10  ;;  %v2071_v37 = vadd.f32 %v2070_v8, %v2028_v22  ;;  %v4497_v8 = vld [vmem:[%s5088_s3 + $0x1c0] sm:$0xff]   ;;  %v2358_v10 = vsel %vm2350_vm7, %v2346_v2, %v2354_v6  ;;  %v4969_v22 = vpop.permute.xlu0 %2392 }
 0x162   : > { %v2031_v25 = vpop.f32.mrf.mxu0  ;;  %v2957_v14 = vpack.c.bf16 %v2358_v10, %v2356_v9  ;;  %v4956_v17 = vld [vmem:[%s5090_s5 + $0x4] ss:$8 sm:$0x3]  ;;  %v4500_v9 = vld [vmem:[%s5088_s3 + $0x238] sm:$0xff]  }
 0x163   : > { %v2032_v27 = vadd.f32 %v2031_v25, %v1989_v21  ;;  %v2073_v32 = vadd.f32 %v2072_v18, %v2030_v23  ;;  %v2074_v33 = vpop.f32.mrf.mxu1  ;;  %v4961_v18 = vld [vmem:[%s5090_s5 + $0x5] ss:$8 sm:$0x3]  ;;  %v2378_v19 = vrot.slane %v4956_v17, %v4733_v51  ;;  %v4967_v21 = vpop.permute.xlu1 %2388  ;;  %v615_v25 = vsub.s32 2, %v4715_v45 }
 0x164   : > { %v2403_v20 = vrot.slane %v4961_v18, %v4733_v51 }
 0x165   : > { %v2075_v38 = vadd.f32 %v2074_v33, %v2032_v27  ;;  %v2444_v47 = vpack.c.bf16 %v2073_v32, %v2069_v39  ;;  %v2384_v27 = vmul.f32 %v2378_v19, %v4949_v15  ;;  %v2382_v28 = vmul.f32 %v2378_v19, %v4951_v16  ;;  %v4980_v33 = vld [vmem:[%s5090_s5 + $0x6] ss:$8 sm:$0x3] }
 0x166   : > { %v2407_v31 = vmul.f32 %v2403_v20, %v4967_v21  ;;  %v2409_v32 = vmul.f32 %v2403_v20, %v4969_v22  ;;  %v2424_v45 = vrot.slane %v4980_v33, %v4733_v51  ;;  %v4504_v19 = vld [vmem:[%s5088_s3 + $0x228] sm:$0xff]   ;;  %v4505_v20 = vld [vmem:[%s5088_s3 + $0x260] sm:$0xff]  }
 0x167   : > { %v2445_v42 = vpack.c.bf16 %v2075_v38, %v2071_v37  ;;  %v616_v37 = vrot.slane %v4867_v30, %v615_v25  ;;  %v4506_v25 = vld [vmem:[%s5088_s3 + $0x220] sm:$0xff]  }
 0x168   : > { %v2411_v38 = vadd.f32 %v2407_v31, %v2382_v28  ;;  %v2413_v39 = vadd.f32 %v2409_v32, %v2384_v27  ;;  %v4509_v32 = vld [vmem:[%s5088_s3 + $0x250] sm:$0xff]  }
 0x169   : > { %2907 = vmatprep.mubr.bf16.mxu1 %v2445_v42 }
 0x16a   : > { %2908 = vmatmul.mubr.bf16.vlgmr.msra.gmra.mxu1 %v2444_v47  ;;  %v2428_v50 = vadd.f32 %v2424_v45, %v2411_v38  ;;  %v2430_v12 = vadd.f32 %v2424_v45, %v2413_v39  ;;  %v4514_v38 = vld [vmem:[%s5088_s3 + $0x200] sm:$0xff]  }
 0x16b   : > { %3946 = vmatpush3.bf16.msra.mxu1 %v4471_v43  ;;  %3119 = vmatprep.mubr.bf16.mxu1 %v2958_v56 }
 0x16c   : > { %3947 = vmatprep.subr.bf16.mxu1 %v4473_v49  ;;  %vm2432_vm8 = vcmp.gt.f32.partialorder %v2428_v50, 0.0  ;;  %v2436_v51 = vmul.f32 0.01, %v2428_v50  ;;  %v2438_v48 = vmul.f32 0.01, %v2430_v12  ;;  %vm2434_vm9 = vcmp.gt.f32.partialorder %v2430_v12, 0.0 }
 0x16f   : > { %3948 = vmatpush3.bf16.msra.mxu1 %v4475_v13 }
 0x170   : > { %3949 = vmatprep.subr.bf16.mxu1 %v4477_v55 }
 0x173   : > { %3950 = vmatpush3.bf16.msra.mxu1 %v4479_v46 }
 0x174   : > { %3951 = vmatprep.subr.bf16.mxu1 %v4481_v29 }
 0x177   : > { %3952 = vmatpush3.bf16.msra.mxu1 %v4483_v57 }
 0x178   : > { %3953 = vmatprep.subr.bf16.mxu1 %v4485_v58 }
 0x17b   : > { %3954 = vmatpush3.bf16.msra.mxu1 %v4487_v62 }
 0x17c   : > { %3955 = vmatprep.subr.bf16.mxu1 %v4489_v0 }
 0x17f   : > { %3956 = vmatpush3.bf16.msra.mxu1 %v4491_v3  ;;  %v2440_v3 = vsel %vm2432_vm8, %v2428_v50, %v2436_v51  ;;  %v4519_v50 = vld [vmem:[%s5089_s4 + $0x18] sm:$0xff]  }
 0x180   : > { %3957 = vmatprep.subr.bf16.mxu1 %v4493_v4  ;;  %v2442_v4 = vsel %vm2434_vm9, %v2430_v12, %v2438_v48  ;;  %v4520_v12 = vld [vmem:[%s5089_s4 + $0x10] sm:$0xff]  }
 0x181   : > { %v3131_v10 = vpack.c.bf16 %v2442_v4, %v2440_v3 }
 0x183   : > { %3958 = vmatpush3.bf16.msra.mxu1 %v4495_v7 }
 0x184   : > { %3959 = vmatprep.subr.bf16.mxu1 %v4497_v8 }
 0x187   : > { %3960 = vmatpush3.bf16.msra.mxu1 %v4498_v11 }
 0x18a   : > { %3120 = vmatmul.mubr.bf16.vlgmr.msra.gmra.mxu1 %v2957_v14  ;;  %v4501_v14 = vld [vmem:[%s5088_s3 + $0x270] sm:$0xff]  }
 0x19c   : > { %v2111_v44 = vpop.f32.mrf.mxu0 }
 0x19d   : > { %v2154_v41 = vpop.f32.mrf.mxu1  ;;  %v2112_v54 = vadd.f32 %v2111_v44, %v616_v37  ;;  %v4502_v44 = vld [vmem:[%s5088_s3 + $0x230] sm:$0xff]  }
 0x19e   : > { %v2113_v23 = vpop.f32.mrf.mxu0 }
 0x19f   : > { %v2156_v24 = vpop.f32.mrf.mxu1  ;;  %v2114_v43 = vadd.f32 %v2113_v23, %v620_v36  ;;  %v2155_v30 = vadd.f32 %v2154_v41, %v2112_v54  ;;  %v4503_v41 = vld [vmem:[%s5088_s3 + $0x268] sm:$0xff]   ;;  %v2374_v23 = vrot.slane %v4956_v17, %v4767_v61  ;;  %v4516_v54 = vld [vmem:[%s5089_s4 + $0x30] sm:$0xff]  }
 0x1a0   : > { %v2115_v34 = vpop.f32.mrf.mxu0 }
 0x1a1   : > { %v2158_v35 = vpop.f32.mrf.mxu1  ;;  %v2116_v53 = vadd.f32 %v2115_v34, %v616_v37  ;;  %v2157_v56 = vadd.f32 %v2156_v24, %v2114_v43  ;;  %v2399_v24 = vrot.slane %v4961_v18, %v4767_v61  ;;  %v2383_v27 = vmul.f32 %v2374_v23, %v4949_v15  ;;  %v4508_v18 = vld [vmem:[%s5088_s3 + $0x218] sm:$0xff]   ;;  %v4512_v37 = vld [vmem:[%s5088_s3 + $0x208] sm:$0xff]  }
 0x1a2   : > { %v2117_v40 = vpop.f32.mrf.mxu0  ;;  %v2381_v28 = vmul.f32 %v2374_v23, %v4951_v16  ;;  %v2420_v34 = vrot.slane %v4980_v33, %v4767_v61  ;;  %v4510_v16 = vld [vmem:[%s5088_s3 + $0x210] sm:$0xff]   ;;  %v4513_v61 = vld [vmem:[%s5088_s3 + $0x240] sm:$0xff]   ;;  %v4515_v43 = vld [vmem:[%s5089_s4 + $0x38] sm:$0xff]  }
 0x1a3   : > { %v2160_v42 = vpop.f32.mrf.mxu1  ;;  %v2118_v13 = vadd.f32 %v2117_v40, %v620_v36  ;;  %v2159_v46 = vadd.f32 %v2158_v35, %v2116_v53  ;;  %v2406_v31 = vmul.f32 %v2399_v24, %v4967_v21  ;;  %v2408_v17 = vmul.f32 %v2399_v24, %v4969_v22  ;;  %v4511_v21 = vld [vmem:[%s5088_s3 + $0x248] sm:$0xff]  }
 0x1a4   : > { %v4568_v53 = vmov 0.0  }
 0x1a5   : > { %v2161_v58 = vadd.f32 %v2160_v42, %v2118_v13  ;;  %v2410_v15 = vadd.f32 %v2406_v31, %v2381_v28  ;;  %v2412_v35 = vadd.f32 %v2408_v17, %v2383_v27  ;;  %3998 = vmatprep.subr.bf16.mxu1 %v4568_v53  ;;  %v4521_v13 = vld [vmem:[%s5089_s4 + $0x8] sm:$0xff]   ;;  %4014 = vmatprep.mubr.msk.bf16.mxu1 %vm4569_vm12, %v4568_v53  ;;  %v2443_v27 = vld [vmem:[%s5091_s6 + $0x1] ss:$0 sm:$0xff] }
 0x1a6   : > { %3999 = vmatpush3.bf16.msra.mxu1 %v4515_v43 }
 0x1a7   : > { %v2427_v22 = vadd.f32 %v2420_v34, %v2410_v15  ;;  %v2429_v36 = vadd.f32 %v2420_v34, %v2412_v35  ;;  %4000 = vmatprep.subr.bf16.mxu1 %v4568_v53 }
 0x1a9   : > { %v2435_v33 = vmul.f32 0.01, %v2427_v22  ;;  %v2437_v45 = vmul.f32 0.01, %v2429_v36  ;;  %vm2431_vm10 = vcmp.gt.f32.partialorder %v2427_v22, 0.0  ;;  %vm2433_vm11 = vcmp.gt.f32.partialorder %v2429_v36, 0.0 }
 0x1aa   : > { %4001 = vmatpush3.bf16.msra.mxu1 %v4516_v54 }
 0x1ab   : > { %v2439_v39 = vsel %vm2431_vm10, %v2427_v22, %v2435_v33  ;;  %v2441_v40 = vsel %vm2433_vm11, %v2429_v36, %v2437_v45  ;;  %4002 = vmatprep.subr.bf16.mxu1 %v4568_v53 }
 0x1ac   : > { %v3130_v42 = vpack.c.bf16 %v2441_v40, %v2439_v39 }
 0x1dc   : > { %v2197_v47 = vpop.f32.mrf.mxu0 }
 0x1dd   : > { %v2240_v49 = vpop.f32.mrf.mxu1  ;;  %v2198_v62 = vadd.f32 %v2197_v47, %v2155_v30  ;;  %v4517_v47 = vld [vmem:[%s5089_s4 + $0x28] sm:$0xff]  }
 0x1de   : > { %v2199_v52 = vpop.f32.mrf.mxu0  ;;  %4003 = vmatpush3.bf16.msra.mxu1 %v4517_v47  ;;  %v3417_v47 = vld [vmem:[%s5091_s6 + $0x4] ss:$0 sm:$0xff] }
 0x1df   : > { %v2242_v55 = vpop.f32.mrf.mxu1  ;;  %v2200_v59 = vadd.f32 %v2199_v52, %v2157_v56  ;;  %v2241_v7 = vadd.f32 %v2240_v49, %v2198_v62  ;;  %v4518_v49 = vld [vmem:[%s5089_s4 + $0x20] sm:$0xff]   ;;  %4004 = vmatprep.subr.bf16.mxu1 %v4568_v53 }
 0x1e0   : > { %v2201_v29 = vpop.f32.mrf.mxu0  ;;  %v4522_v52 = vld [vmem:[%s5089_s4] sm:$0xff]  }
 0x1e1   : > { %v2244_v57 = vpop.f32.mrf.mxu1  ;;  %v2202_v60 = vadd.f32 %v2201_v29, %v2159_v46  ;;  %v2243_v5 = vadd.f32 %v2242_v55, %v2200_v59 }
 0x1e2   : > { %v2203_v63 = vpop.f32.mrf.mxu0  ;;  %4005 = vmatpush3.bf16.msra.mxu1 %v4518_v49 }
 0x1e3   : > { %v2204_v0 = vadd.f32 %v2203_v63, %v2161_v58  ;;  %v2245_v1 = vadd.f32 %v2244_v57, %v2202_v60  ;;  %v2246_v2 = vpop.f32.mrf.mxu1  ;;  %4006 = vmatprep.subr.bf16.mxu1 %v4568_v53 }
 0x1e5   : > { %v2247_v6 = vadd.f32 %v2246_v2, %v2204_v0  ;;  %v2446_v11 = vpack.c.bf16 %v2245_v1, %v2241_v7 }
 0x1e6   : > { %4007 = vmatpush3.bf16.msra.mxu1 %v4519_v50 }
 0x1e7   : > { %v2447_v8 = vpack.c.bf16 %v2247_v6, %v2243_v5  ;;  %4008 = vmatprep.subr.bf16.mxu1 %v4568_v53 }
 0x1e9   : > { %2948 = vmatprep.mubr.bf16.mxu0 %v2447_v8 }
 0x1ea   : > { %2949 = vmatmul.mubr.bf16.vlgmr.msra.gmra.mxu0 %v2446_v11  ;;  %4009 = vmatpush3.bf16.msra.mxu1 %v4520_v12 }
 0x1eb   : > { %3968 = vmatpush3.bf16.msra.mxu0 %v4500_v9  ;;  %3292 = vmatprep.mubr.bf16.mxu0 %v3131_v10 }
 0x1ec   : > { %3969 = vmatprep.subr.bf16.mxu0 %v4501_v14  ;;  %4010 = vmatprep.subr.bf16.mxu1 %v4568_v53 }
 0x1ee   : > { %4011 = vmatpush3.bf16.msra.mxu1 %v4521_v13 }
 0x1ef   : > { %3970 = vmatpush3.bf16.msra.mxu0 %v4502_v44  ;;  %4012 = vmatprep.subr.bf16.mxu1 %v4568_v53 }
 0x1f0   : > { %3971 = vmatprep.subr.bf16.mxu0 %v4503_v41 }
 0x1f2   : > { %4013 = vmatpush3.bf16.msra.mxu1 %v4522_v52 }
 0x1f3   : > { %3972 = vmatpush3.bf16.msra.mxu0 %v4504_v19 }
 0x1f4   : > { %3973 = vmatprep.subr.bf16.mxu0 %v4505_v20 }
 0x1f7   : > { %3974 = vmatpush3.bf16.msra.mxu0 %v4506_v25 }
 0x1f8   : > { %3975 = vmatprep.subr.bf16.mxu0 %v4507_v26 }
 0x1fb   : > { %3976 = vmatpush3.bf16.msra.mxu0 %v4508_v18 }
 0x1fc   : > { %3977 = vmatprep.subr.bf16.mxu0 %v4509_v32  ;;  %v3895_v55 = vpop.f32.mrf.mxu0 }
 0x1fe   : > { %v3896_v46 = vpop.f32.mrf.mxu0 }
 0x1ff   : > { %3978 = vmatpush3.bf16.msra.mxu0 %v4510_v16  ;;  %v3897_v0 = vadd.f32 %v3896_v46, %v3895_v55 }
 0x200   : > { %3979 = vmatprep.subr.bf16.mxu0 %v4511_v21  ;;  %v3898_v29 = vpop.f32.mrf.mxu0  ;;  %v3307_v21 = vld [vmem:[%s5091_s6 + $0x2] ss:$0 sm:$0xff] }
 0x202   : > { %v3899_v51 = vpop.f32.mrf.mxu0 }
 0x203   : > { %3980 = vmatpush3.bf16.msra.mxu0 %v4512_v37  ;;  %v3900_v6 = vadd.f32 %v3899_v51, %v3898_v29 }
 0x204   : > { %3981 = vmatprep.subr.bf16.mxu0 %v4513_v61  ;;  %v3416_v61 = vld [vmem:[%s5091_s6 + $0x3] ss:$0 sm:$0xff] }
 0x207   : > { %3982 = vmatpush3.bf16.msra.mxu0 %v4514_v38 }
 0x20a   : > { %3293 = vmatmul.mubr.bf16.vlgmr.msra.gmra.mxu0 %v3130_v42 }
 0x22a   : > { %v3917_v56 = vpop.f32.mrf.mxu1 }
 0x22c   : > { %v3918_v30 = vpop.f32.mrf.mxu1 }
 0x22d   : > { %v3919_v1 = vadd.f32 %v3918_v30, %v3917_v56 }
 0x22e   : > { %v3920_v57 = vpop.f32.mrf.mxu1 }
 0x22f   : > { %v2910_v5 = vadd.f32 %v3919_v1, %v3897_v0 }
 0x230   : > { %v3921_v58 = vpop.f32.mrf.mxu1 }
 0x231   : > { %v3922_v7 = vadd.f32 %v3921_v58, %v3920_v57 }
 0x233   : > { %v2913_v44 = vadd.f32 %v3922_v7, %v3900_v6 }
 0x24a   : > { %v3961_v60 = vpop.f32.mrf.mxu1 }
 0x24c   : > { %v3962_v63 = vpop.f32.mrf.mxu1 }
 0x24d   : > { %v3963_v9 = vadd.f32 %v3962_v63, %v3961_v60 }
 0x24e   : > { %v3964_v4 = vpop.f32.mrf.mxu1 }
 0x250   : > { %v3965_v11 = vpop.f32.mrf.mxu1 }
 0x251   : > { %v3966_v23 = vadd.f32 %v3965_v11, %v3964_v4 }
 0x2aa   : > { %v3939_v48 = vpop.f32.mrf.mxu0 }
 0x2ac   : > { %v3940_v59 = vpop.f32.mrf.mxu0 }
 0x2ad   : > { %v3941_v2 = vadd.f32 %v3940_v59, %v3939_v48 }
 0x2ae   : > { %v3942_v62 = vpop.f32.mrf.mxu0 }
 0x2af   : > { %v2951_v8 = vadd.f32 %v3941_v2, %v2910_v5 }
 0x2b0   : > { %v3943_v3 = vpop.f32.mrf.mxu0 }
 0x2b1   : > { %v3944_v10 = vadd.f32 %v3943_v3, %v3942_v62  ;;  %v3128_v19 = vadd.f32 %v3963_v9, %v2951_v8 }
 0x2b3   : > { %v2954_v20 = vadd.f32 %v3944_v10, %v2913_v44 }
 0x2b5   : > { %v3129_v31 = vadd.f32 %v3966_v23, %v2954_v20 }
 0x2ca   : > { %v3983_v14 = vpop.f32.mrf.mxu0 }
 0x2cc   : > { %v3984_v41 = vpop.f32.mrf.mxu0 }
 0x2cd   : > { %v3985_v24 = vadd.f32 %v3984_v41, %v3983_v14 }
 0x2ce   : > { %v3986_v25 = vpop.f32.mrf.mxu0 }
 0x2cf   : > { %v3301_v26 = vadd.f32 %v3985_v24, %v3128_v19 }
 0x2d0   : > { %v3987_v28 = vpop.f32.mrf.mxu0 }
 0x2d1   : > { %v3988_v17 = vadd.f32 %v3987_v28, %v3986_v25  ;;  %v3303_v18 = vadd.f32 %v3301_v26, %v2443_v27 }
 0x2d3   : > { %v3302_v32 = vadd.f32 %v3988_v17, %v3129_v31  ;;  %v3305_v15 = vmax.f32 %v3303_v18, 0.0 }
 0x2d5   : > { %v3304_v34 = vadd.f32 %v3302_v32, %v2443_v27 }
 0x2d7   : > { %v3306_v35 = vmax.f32 %v3304_v34, 0.0 }
 0x2d9   : > { %v3308_v16 = vpack.c.bf16 %v3306_v35, %v3305_v15 }
 0x2db   : > { %4015 = vmatmul.mubr.bf16.vlgmr.msra.gmra.mxu1 %v3308_v16 }
 0x39b   : > { %v3407_v22 = vpop.f32.mrf.mxu1 }
 0x39c   : > { %v3408_v36 = vadd.f32 %v3407_v22, %v3307_v21 }
 0x39d   : > { %v4016_v37 = vpop.f32.mrf.mxu1 }
 0x39e   : > { %v3414_v33 = vmax.f32 %v3408_v36, 0.0 }
 0x39f   : > { %v3410_v45 = vpop.f32.mrf.mxu1 }
 0x3a0   : > { %v3411_v38 = vadd.f32 %v3410_v45, %v3307_v21  ;;  %v3418_v39 = vmul.f32 %v3416_v61, %v3414_v33 }
 0x3a1   : > { %v4017_v40 = vpop.f32.mrf.mxu1 }
 0x3a2   : > { %v3415_v42 = vmax.f32 %v3411_v38, 0.0  ;;  %v3421_v43 = vsel %vm3420_vm13, %v3418_v39, 0.0 }
 0x3a3   : > { %3422 = vadd.xlane.f32.xlu1 %v3421_v43 }
 0x3a4   : > { %v3419_v53 = vmul.f32 %v3416_v61, %v3415_v42 }
 0x3a6   : > { %v3424_v54 = vsel %vm3420_vm13, %v3419_v53, 0.0 }
 0x3a7   : > { %3425 = vadd.xlane.f32.xlu0 %v3424_v54 }
 0x42c   : > { %v3423_v49 = vpop.xlane.xlu1 %3422 }
 0x42d   : > { %v3427_v50 = vadd.f32 %v3423_v49, %v3417_v47 }
 0x42f   : > { %3430 = vst.msk [vmem:[%s320_s23] sm:$0xff] %vm3429_vm14, %v3427_v50 }
 0x430   : > { %v3426_v12 = vpop.xlane.xlu0 %3425 }
 0x431   : > { %v3428_v13 = vadd.f32 %v3426_v12, %v3417_v47 }
 0x433   : > { %3431 = vst.msk [vmem:[%s320_s23 + $0x8] sm:$0xff] %vm3429_vm14, %v3428_v13 }
 0x434 PF: > { %s18_s24 = sadd.s32 1, %s4559_s24  }
 0x435   : > { %p15_p1 = scmp.ge.s32.totalorder %s18_s24, 4  }
 0x437   :  { %17 = sbr.rel (!%p15_p1) target bundleno = 1 (0x1), region = 92 }
 0x43c   :  { %3454 = vsyncpa [#allocation3], 1 }
 0x43d   :  { %3456 = vsyncpa [#allocation3 + $0x1], 1 }

</bundles_post_ra>
